<compile_context>
chip_gen: v5e
topology: v5e:2x2
jax: 0.10.0
libtpu: 0.0.40
codegen_flags: <defaults>
</compile_context>

<pallas_src>
import functools

import jax
import jax.numpy as jnp
from jax.experimental import pallas as pl
from jax.experimental.pallas import tpu as pltpu

_HIGHEST = jax.lax.Precision.HIGHEST


def _round_up(x: int, m: int) -> int:
    return ((x + m - 1) // m) * m


# --------------------------------------------------------------------------
# Kernel 1: node-feature transform   xw = x @ W      (computed once)
# --------------------------------------------------------------------------
def _xw_kernel(x_ref, w_ref, o_ref):
    o_ref[...] = jnp.dot(
        x_ref[...],
        w_ref[...],
        preferred_element_type=jnp.float32,
        precision=_HIGHEST,
    ).astype(o_ref.dtype)


def _transform_features(x_pad, w_pad, tile_rows):
    n_pad, in_f = x_pad.shape
    out_pad = w_pad.shape[1]
    grid = (n_pad // tile_rows,)
    return pl.pallas_call(
        _xw_kernel,
        out_shape=jax.ShapeDtypeStruct((n_pad, out_pad), jnp.float32),
        grid_spec=pltpu.PrefetchScalarGridSpec(
            num_scalar_prefetch=0,
            grid=grid,
            in_specs=[
                pl.BlockSpec((tile_rows, in_f), lambda i: (i, 0)),
                pl.BlockSpec((in_f, out_pad), lambda i: (0, 0)),
            ],
            out_specs=pl.BlockSpec((tile_rows, out_pad), lambda i: (i, 0)),
        ),
        compiler_params=pltpu.CompilerParams(
            dimension_semantics=("parallel",)
        ),
        cost_estimate=pl.CostEstimate(
            flops=2 * n_pad * in_f * out_pad,
            transcendentals=0,
            bytes_accessed=4 * (n_pad * in_f + in_f * out_pad + n_pad * out_pad),
        ),
    )(x_pad, w_pad)


# --------------------------------------------------------------------------
# Kernel 2: neighbourhood aggregation   out = A @ xw   (K-tiled, accumulated)
# --------------------------------------------------------------------------
def _gcn_agg_kernel(a_ref, xw_ref, o_ref, acc_ref):
    k = pl.program_id(1)

    @pl.when(k == 0)
    def _init():
        acc_ref[...] = jnp.zeros_like(acc_ref)

    acc_ref[...] += jnp.dot(
        a_ref[...],
        xw_ref[...],
        preferred_element_type=jnp.float32,
        precision=_HIGHEST,
    )

    @pl.when(k == pl.num_programs(1) - 1)
    def _done():
        o_ref[...] = acc_ref[...].astype(o_ref.dtype)


@functools.partial(jax.jit, static_argnames=("tile_m", "tile_k"))
def gcn_conv_fixed_w(W, x, A, tile_m=512, tile_k=256):
    """Pallas implementation of GCNConv_Fixed_W.forward: A @ x @ W (square A)."""
    n_rows, n_cols = A.shape
    n_nodes, in_features = x.shape
    out_features = W.shape[1]
    assert W.shape[0] == in_features
    assert n_cols == n_nodes, "square-A (no sources_mask) path only"

    out_dtype = x.dtype

    # Lane-dense padded output width (multiple of the 128-lane vreg width).
    out_pad = _round_up(out_features, 128)

    # Clamp tiles to the (aligned) problem size; keep (8, 128) tiling legal.
    tile_m = min(tile_m, _round_up(n_rows, 8))      # sublane-aligned row tile
    tile_k = min(tile_k, _round_up(n_cols, 128))    # lane-aligned K tile

    n_rows_pad = _round_up(n_rows, tile_m)
    n_cols_pad = _round_up(n_cols, tile_k)

    A_pad = jnp.pad(A.astype(jnp.float32),
                    ((0, n_rows_pad - n_rows), (0, n_cols_pad - n_cols)))
    x_pad = jnp.pad(x.astype(jnp.float32),
                    ((0, n_cols_pad - n_nodes), (0, 0)))
    W_pad = jnp.pad(W.astype(jnp.float32),
                    ((0, 0), (0, out_pad - out_features)))

    # 1) xw = x @ W, computed once (was recomputed per grid step before).
    xw = _transform_features(x_pad, W_pad, tile_k)

    # 2) out = A @ xw, K-tiled with a VMEM f32 accumulator.
    # VMEM footprint (f32, double-buffered inputs/outputs):
    #   2*tile_m*tile_k + 2*tile_k*out_pad + 3*tile_m*out_pad  ~= 2.5 MiB
    #   at (512, 256, 128)  -> far below v7x's 32 MiB scoped default.
    grid = (n_rows_pad // tile_m, n_cols_pad // tile_k)
    out_padded = pl.pallas_call(
        _gcn_agg_kernel,
        out_shape=jax.ShapeDtypeStruct((n_rows_pad, out_pad), out_dtype),
        grid_spec=pltpu.PrefetchScalarGridSpec(
            num_scalar_prefetch=0,
            grid=grid,
            in_specs=[
                pl.BlockSpec((tile_m, tile_k), lambda i, k: (i, k)),
                pl.BlockSpec((tile_k, out_pad), lambda i, k: (k, 0)),
            ],
            out_specs=pl.BlockSpec((tile_m, out_pad), lambda i, k: (i, 0)),
            scratch_shapes=[pltpu.VMEM((tile_m, out_pad), jnp.float32)],
        ),
        compiler_params=pltpu.CompilerParams(
            dimension_semantics=("parallel", "arbitrary"),
        ),
        cost_estimate=pl.CostEstimate(
            flops=2 * n_rows_pad * n_cols_pad * out_pad,
            transcendentals=0,
            bytes_accessed=4 * (n_rows_pad * n_cols_pad
                                + grid[0] * n_cols_pad * out_pad
                                + n_rows_pad * out_pad),
        ),
    )(A_pad, xw)

    return out_padded[:n_rows, :out_features].astype(out_dtype)


def gcn_forward(W, x, A, normalize=False, add_self_loops=False):
    """Glue mirroring GCNConv_Fixed_W.forward for square A (no sources_mask)."""
    # TODO(synk): sources_mask (rectangular A + boolean gather) path is not
    # implemented; dynamic boolean indexing has no static-shape Pallas mapping.
    if add_self_loops:
        n = A.shape[0]
        A = A + jnp.eye(n, dtype=A.dtype)
    if normalize:
        # Matches the module exactly: D^{-1/2} A D^{-1/2} with deg = A.sum(1).
        deg = jnp.sqrt(A.sum(axis=1))
        inv = jnp.where(deg > 0, 1.0 / deg, 0.0)
        A = inv[:, None] * A * inv[None, :]
    return gcn_conv_fixed_w(W, x, A)


if __name__ == "__main__":
    # Small deterministic shapes consistent with the module:
    #   n_nodes=128, in_features=32, out_features=16
    n_nodes, in_features, out_features = 128, 32, 16

    key = jax.random.PRNGKey(0)
    k_w, k_x, k_a = jax.random.split(key, 3)

    W = jax.random.normal(k_w, (in_features, out_features), dtype=jnp.float32)
    x = jax.random.normal(k_x, (n_nodes, in_features), dtype=jnp.float32)
    # Non-negative adjacency (so the normalize path is also valid).
    A = jax.random.uniform(k_a, (n_nodes, n_nodes), dtype=jnp.float32)

    # --- default path: A @ x @ W ---
    out = jax.block_until_ready(gcn_forward(W, x, A))
    ref = jnp.dot(A, jnp.dot(x, W, precision=_HIGHEST), precision=_HIGHEST)
    assert out.shape == (n_nodes, out_features)
    assert jnp.allclose(out, ref, atol=1e-4, rtol=1e-4)

    # --- add_self_loops + normalize path (glue) ---
    out2 = jax.block_until_ready(
        gcn_forward(W, x, A, normalize=True, add_self_loops=True))
    A2 = A + jnp.eye(n_nodes, dtype=A.dtype)
    deg = jnp.sqrt(A2.sum(axis=1))
    inv = jnp.where(deg > 0, 1.0 / deg, 0.0)
    A2n = inv[:, None] * A2 * inv[None, :]
    ref2 = jnp.dot(A2n, jnp.dot(x, W, precision=_HIGHEST), precision=_HIGHEST)
    assert jnp.allclose(out2, ref2, atol=1e-4, rtol=1e-4)

    # --- n_nodes not a multiple of the tile (exercises the padding path) ---
    n3 = 200
    k_x3, k_a3 = jax.random.split(k_a)
    x3 = jax.random.normal(k_x3, (n3, in_features), dtype=jnp.float32)
    A3 = jax.random.uniform(k_a3, (n3, n3), dtype=jnp.float32)
    out3 = jax.block_until_ready(gcn_forward(W, x3, A3))
    ref3 = jnp.dot(A3, jnp.dot(x3, W, precision=_HIGHEST), precision=_HIGHEST)
    assert out3.shape == (n3, out_features)
    assert jnp.allclose(out3, ref3, atol=1e-4, rtol=1e-4)

    print("KERNEL_OK")
</pallas_src>

<mosaic_0001>
module attributes {stable_mosaic.version = 11 : i64} {
  func.func @_xw_kernel(%arg0: i32, %arg1: memref<128x32xf32, #tpu.memory_space<vmem>>, %arg2: memref<32x128xf32, #tpu.memory_space<vmem>>, %arg3: memref<128x128xf32, #tpu.memory_space<vmem>>) attributes {dimension_semantics = [#tpu.dimension_semantics<parallel>], iteration_bounds = array<i64: 1>, scalar_prefetch = 0 : i64, scratch_operands = 0 : i64, tpu.core_type = #tpu.core_type<tc>, window_params = [{transform_indices = @transform_0, window_bounds = array<i64: 128, 32>}, {pipeline_mode = #tpu.pipeline_mode<synchronous>, transform_indices = @transform_1, window_bounds = array<i64: 32, 128>}, {transform_indices = @transform_2, window_bounds = array<i64: 128, 128>}]} {
    %c0 = arith.constant 0 : index
    %c0_0 = arith.constant 0 : index
    %0 = vector.load %arg1[%c0, %c0_0] : memref<128x32xf32, #tpu.memory_space<vmem>>, vector<128x32xf32>
    %c0_1 = arith.constant 0 : index
    %c0_2 = arith.constant 0 : index
    %1 = vector.load %arg2[%c0_1, %c0_2] : memref<32x128xf32, #tpu.memory_space<vmem>>, vector<32x128xf32>
    %cst = arith.constant dense<0.000000e+00> : vector<128x128xf32>
    %2 = tpu.matmul %0, %1, %cst {dimension_numbers = #tpu.dot_dimension_numbers<[1], [0], [0], [1], [0, 0, 1, 1], [], []>, precision = #tpu.contract_precision<fp32>} : vector<128x32xf32>, vector<32x128xf32>, vector<128x128xf32> -> vector<128x128xf32>
    %c0_3 = arith.constant 0 : index
    %c0_4 = arith.constant 0 : index
    %3 = vector.load %arg3[%c0_3, %c0_4] : memref<128x128xf32, #tpu.memory_space<vmem>>, vector<128x128xf32>
    tpu.vector_store %arg3[%c0_3, %c0_4], %2 {strides = array<i32>} : memref<128x128xf32, #tpu.memory_space<vmem>>, vector<128x128xf32>,
    return
  }
  func.func @transform_0(%arg0: i32) -> (i32, i32) {
    %c0_i32 = arith.constant 0 : i32
    %c0_i32_0 = arith.constant 0 : i32
    return %arg0, %c0_i32 : i32, i32
  }
  func.func @transform_1(%arg0: i32) -> (i32, i32) {
    %c0_i32 = arith.constant 0 : i32
    %c0_i32_0 = arith.constant 0 : i32
    %c0_i32_1 = arith.constant 0 : i32
    return %c0_i32, %c0_i32_0 : i32, i32
  }
  func.func @transform_2(%arg0: i32) -> (i32, i32) {
    %c0_i32 = arith.constant 0 : i32
    %c0_i32_0 = arith.constant 0 : i32
    return %arg0, %c0_i32 : i32, i32
  }
}

module attributes {stable_mosaic.version = 11 : i64} {
  func.func @_gcn_agg_kernel(%arg0: i32, %arg1: i32, %arg2: memref<128x128xf32, #tpu.memory_space<vmem>>, %arg3: memref<128x128xf32, #tpu.memory_space<vmem>>, %arg4: memref<128x128xf32, #tpu.memory_space<vmem>>, %arg5: memref<128x128xf32, #tpu.memory_space<vmem>>) attributes {dimension_semantics = [#tpu.dimension_semantics<parallel>, #tpu.dimension_semantics<arbitrary>], iteration_bounds = array<i64: 1, 1>, scalar_prefetch = 0 : i64, scratch_operands = 1 : i64, tpu.core_type = #tpu.core_type<tc>, window_params = [{transform_indices = @transform_0, window_bounds = array<i64: 128, 128>}, {transform_indices = @transform_1, window_bounds = array<i64: 128, 128>}, {transform_indices = @transform_2, window_bounds = array<i64: 128, 128>}]} {
    %c0_i32 = arith.constant 0 : i32
    %0 = arith.cmpi eq, %arg1, %c0_i32 : i32
    %1 = arith.extui %0 : i1 to i32
    %c0_i32_0 = arith.constant 0 : i32
    %2 = arith.cmpi ne, %1, %c0_i32_0 : i32
    scf.if %2 {
      %cst_10 = arith.constant 0.000000e+00 : f32
      %12 = vector.broadcast %cst_10 : f32 to vector<128x128xf32>
      %c0_11 = arith.constant 0 : index
      %c0_12 = arith.constant 0 : index
      %13 = vector.load %arg5[%c0_11, %c0_12] : memref<128x128xf32, #tpu.memory_space<vmem>>, vector<128x128xf32>
      tpu.vector_store %arg5[%c0_11, %c0_12], %12 {strides = array<i32>} : memref<128x128xf32, #tpu.memory_space<vmem>>, vector<128x128xf32>,
    } else {
    }
    %c0 = arith.constant 0 : index
    %c0_1 = arith.constant 0 : index
    %3 = vector.load %arg5[%c0, %c0_1] : memref<128x128xf32, #tpu.memory_space<vmem>>, vector<128x128xf32>
    %c0_2 = arith.constant 0 : index
    %c0_3 = arith.constant 0 : index
    %4 = vector.load %arg2[%c0_2, %c0_3] : memref<128x128xf32, #tpu.memory_space<vmem>>, vector<128x128xf32>
    %c0_4 = arith.constant 0 : index
    %c0_5 = arith.constant 0 : index
    %5 = vector.load %arg3[%c0_4, %c0_5] : memref<128x128xf32, #tpu.memory_space<vmem>>, vector<128x128xf32>
    %cst = arith.constant dense<0.000000e+00> : vector<128x128xf32>
    %6 = tpu.matmul %4, %5, %cst {dimension_numbers = #tpu.dot_dimension_numbers<[1], [0], [0], [1], [0, 0, 1, 1], [], []>, precision = #tpu.contract_precision<fp32>} : vector<128x128xf32>, vector<128x128xf32>, vector<128x128xf32> -> vector<128x128xf32>
    %7 = arith.addf %3, %6 : vector<128x128xf32>
    %c0_6 = arith.constant 0 : index
    %c0_7 = arith.constant 0 : index
    %8 = vector.load %arg5[%c0_6, %c0_7] : memref<128x128xf32, #tpu.memory_space<vmem>>, vector<128x128xf32>
    tpu.vector_store %arg5[%c0_6, %c0_7], %7 {strides = array<i32>} : memref<128x128xf32, #tpu.memory_space<vmem>>, vector<128x128xf32>,
    %c0_i32_8 = arith.constant 0 : i32
    %9 = arith.cmpi eq, %arg1, %c0_i32_8 : i32
    %10 = arith.extui %9 : i1 to i32
    %c0_i32_9 = arith.constant 0 : i32
    %11 = arith.cmpi ne, %10, %c0_i32_9 : i32
    scf.if %11 {
      %c0_10 = arith.constant 0 : index
      %c0_11 = arith.constant 0 : index
      %12 = vector.load %arg5[%c0_10, %c0_11] : memref<128x128xf32, #tpu.memory_space<vmem>>, vector<128x128xf32>
      %c0_12 = arith.constant 0 : index
      %c0_13 = arith.constant 0 : index
      %13 = vector.load %arg4[%c0_12, %c0_13] : memref<128x128xf32, #tpu.memory_space<vmem>>, vector<128x128xf32>
      tpu.vector_store %arg4[%c0_12, %c0_13], %12 {strides = array<i32>} : memref<128x128xf32, #tpu.memory_space<vmem>>, vector<128x128xf32>,
    } else {
    }
    return
  }
  func.func @transform_0(%arg0: i32, %arg1: i32) -> (i32, i32) {
    %c0_i32 = arith.constant 0 : i32
    return %arg0, %arg1 : i32, i32
  }
  func.func @transform_1(%arg0: i32, %arg1: i32) -> (i32, i32) {
    %c0_i32 = arith.constant 0 : i32
    %c0_i32_0 = arith.constant 0 : i32
    return %arg1, %c0_i32 : i32, i32
  }
  func.func @transform_2(%arg0: i32, %arg1: i32) -> (i32, i32) {
    %c0_i32 = arith.constant 0 : i32
    %c0_i32_0 = arith.constant 0 : i32
    return %arg0, %c0_i32 : i32, i32
  }
}

</mosaic_0001>

<bundles_post_ra>
// kernel: gcn_conv_fixed_w.2
= control target key start
LH: loop header
LB: loop body
LE: loop exit
PB: predicated region body
PF: predicated region fallthrough
CT: control target
= control target key end

     0   :  { %vm31_vm0 = vcmask 261120   ;;  %s1222_s1 = inlined_call_operand.vmem [shape: f32[32,128], index: 1, kind: input, shape index: {}]   ;;  %s1223_s0 = inlined_call_operand.vmem [shape: f32[128,32], index: 0, kind: input, shape index: {}]   ;;  %s1224_s2 = inlined_call_operand.vmem [shape: f32[128,128], index: 2, kind: output, shape index: {}]  }
   0x1   :  { %v30_v0 = vld [vmem:[%s1222_s1 + $0x18] sm:$0xff]  ;;  %v29_v1 = vld [vmem:[%s1222_s1 + $0x10] sm:$0xff]  ;;  %v28_v2 = vld [vmem:[%s1222_s1 + $0x8] sm:$0xff] }
   0x2   :  { %v782_v3 = vand.u32 4294901760, %v30_v0  ;;  %v784_v4 = vand.u32 4294901760, %v29_v1  ;;  %v786_v5 = vand.u32 4294901760, %v28_v2  ;;  %v27_v6 = vld [vmem:[%s1222_s1] sm:$0xff]  ;;  %v20_v8 = vld [vmem:[%s1223_s0 + $0x48] sm:$0xff]  ;;  %v21_v13 = vld [vmem:[%s1223_s0 + $0x50] sm:$0xff] }
   0x3   :  { %v19_v7 = vld [vmem:[%s1223_s0 + $0x40] sm:$0xff]  ;;  %v797_v9 = vand.u32 4294901760, %v27_v6  ;;  %v60_v11 = vsel %vm31_vm0, %v20_v8, 0  ;;  %v63_v21 = vsel %vm31_vm0, %v21_v13, 0  ;;  %v12_v36 = vld [vmem:[%s1223_s0 + $0x8] sm:$0xff]  ;;  %v13_v37 = vld [vmem:[%s1223_s0 + $0x10] sm:$0xff] }
   0x4   :  { %v57_v10 = vsel %vm31_vm0, %v19_v7, 0  ;;  %v11_v12 = vld [vmem:[%s1223_s0] sm:$0xff]  ;;  %750 = vmatpush.msra.mxu2 %v782_v3  ;;  %v242_v14 = vsub.f32 %v30_v0, %v782_v3  ;;  %v248_v16 = vsub.f32 %v29_v1, %v784_v4  ;;  %v254_v17 = vsub.f32 %v28_v2, %v786_v5  ;;  %93 = vmatpush.msra.mxu0 %v782_v3  ;;  %v22_v46 = vld [vmem:[%s1223_s0 + $0x58] sm:$0xff] }
   0x5   :  { %v809_v15 = vand.u32 4294901760, %v57_v10  ;;  %v815_v18 = vsub.f32 %v27_v6, %v797_v9  ;;  %v817_v19 = vand.u32 4294901760, %v60_v11  ;;  %v33_v20 = vsel %vm31_vm0, %v11_v12, 0  ;;  %v14_v57 = vld [vmem:[%s1223_s0 + $0x18] sm:$0xff]  ;;  %v23_v1 = vld [vmem:[%s1223_s0 + $0x60] sm:$0xff] }
   0x6   :  { %751 = vmatpush.msra.mxu2 %v784_v4  ;;  %v243_v22 = vand.u32 4294901760, %v242_v14  ;;  %v249_v24 = vand.u32 4294901760, %v248_v16  ;;  %v255_v25 = vand.u32 4294901760, %v254_v17  ;;  %95 = vmatpush.msra.mxu0 %v784_v4  ;;  %v830_v28 = vand.u32 4294901760, %v33_v20 }
   0x7   :  { %v823_v23 = vsub.f32 %v57_v10, %v809_v15  ;;  %v261_v26 = vand.u32 4294901760, %v815_v18  ;;  %v828_v27 = vsub.f32 %v60_v11, %v817_v19  ;;  %v841_v35 = vand.u32 4294901760, %v63_v21  ;;  %v15_v11 = vld [vmem:[%s1223_s0 + $0x20] sm:$0xff] }
   0x8   :  { %752 = vmatpush.msra.mxu2 %v786_v5  ;;  %v244_v29 = vsub.f32 %v242_v14, %v243_v22  ;;  %v250_v31 = vsub.f32 %v248_v16, %v249_v24  ;;  %v256_v32 = vsub.f32 %v254_v17, %v255_v25  ;;  %97 = vmatpush.msra.mxu0 %v786_v5  ;;  %v36_v45 = vsel %vm31_vm0, %v12_v36, 0 }
   0x9   :  { %v166_v30 = vand.u32 4294901760, %v823_v23  ;;  %v262_v33 = vsub.f32 %v815_v18, %v261_v26  ;;  %v839_v34 = vsub.f32 %v33_v20, %v830_v28  ;;  %v174_v41 = vand.u32 4294901760, %v828_v27 }
   0xa   :  { %753 = vmatpush.msra.mxu2 %v797_v9  ;;  %v245_v38 = vand.u32 4294901760, %v244_v29  ;;  %v251_v40 = vand.u32 4294901760, %v250_v31  ;;  %99 = vmatpush.msra.mxu0 %v797_v9  ;;  %v257_v44 = vand.u32 4294901760, %v256_v32  ;;  %v39_v47 = vsel %vm31_vm0, %v13_v37, 0  ;;  %v25_v37 = vld [vmem:[%s1223_s0 + $0x70] sm:$0xff] }
   0xb   :  { %v167_v39 = vsub.f32 %v823_v23, %v166_v30  ;;  %v102_v42 = vand.u32 4294901760, %v839_v34  ;;  %v864_v49 = vand.u32 4294901760, %v36_v45  ;;  %v263_v50 = vand.u32 4294901760, %v262_v33 }
   0xc   :  { %344 = vmatpush.msrb.mxu2 %v242_v14  ;;  %567 = vmatpush.msrb.mxu0 %v243_v22  ;;  %v175_v51 = vsub.f32 %v828_v27, %v174_v41  ;;  %v870_v52 = vsub.f32 %v63_v21, %v841_v35  ;;  %v872_v53 = vand.u32 4294901760, %v39_v47  ;;  %v66_v56 = vsel %vm31_vm0, %v22_v46, 0  ;;  %v17_v46 = vld [vmem:[%s1223_s0 + $0x30] sm:$0xff] }
   0xd   :  { %754 = vmatpush.msra.mxu3 %v245_v38  ;;  %v168_v43 = vand.u32 4294901760, %v167_v39  ;;  %246 = vmatpush.msra.mxu1 %v245_v38  ;;  %v103_v48 = vsub.f32 %v839_v34, %v102_v42  ;;  %v875_v55 = vsub.f32 %v36_v45, %v864_v49  ;;  %v886_v62 = vand.u32 4294901760, %v66_v56 }
   0xe   :  { %347 = vmatpush.msrb.mxu2 %v248_v16  ;;  %571 = vmatpush.msrb.mxu0 %v249_v24  ;;  %v883_v59 = vsub.f32 %v39_v47, %v872_v53  ;;  %v176_v60 = vand.u32 4294901760, %v175_v51  ;;  %v182_v61 = vand.u32 4294901760, %v870_v52  ;;  %v42_v63 = vsel %vm31_vm0, %v14_v57, 0  ;;  %v26_v57 = vld [vmem:[%s1223_s0 + $0x78] sm:$0xff] }
   0xf   :  { %169 = vmatmul.f32.vlgmr.msra.gmra.mxu2 %v168_v43  ;;  %755 = vmatpush.msra.mxu3 %v251_v40  ;;  %v104_v54 = vand.u32 4294901760, %v103_v48  ;;  %v110_v58 = vand.u32 4294901760, %v875_v55  ;;  %v901_v7 = vand.u32 4294901760, %v42_v63  ;;  %v910_v10 = vsub.f32 %v66_v56, %v886_v62 }
  0x10   :  { %252 = vmatpush.msra.mxu1 %v251_v40  ;;  %350 = vmatpush.msrb.mxu2 %v254_v17  ;;  %v118_v6 = vand.u32 4294901760, %v883_v59  ;;  %v183_v8 = vsub.f32 %v870_v52, %v182_v61  ;;  %v45_v17 = vsel %vm31_vm0, %v15_v11, 0  ;;  %v75_v45 = vsel %vm31_vm0, %v25_v37, 0 }
  0x11   :  { %756 = vmatpush.msra.mxu3 %v257_v44  ;;  %575 = vmatpush.msrb.mxu0 %v255_v25  ;;  %v111_v0 = vsub.f32 %v875_v55, %v110_v58  ;;  %v922_v13 = vsub.f32 %v42_v63, %v901_v7  ;;  %v190_v16 = vand.u32 4294901760, %v910_v10  ;;  %v937_v21 = vand.u32 4294901760, %v45_v17  ;;  %v16_v25 = vld [vmem:[%s1223_s0 + $0x28] sm:$0xff] }
  0x12   :  { %258 = vmatpush.msra.mxu1 %v257_v44  ;;  %105 = vmatmul.f32.vlgmr.msra.gmra.mxu0 %v104_v54  ;;  %v119_v12 = vsub.f32 %v883_v59, %v118_v6  ;;  %v184_v14 = vand.u32 4294901760, %v183_v8  ;;  %v48_v36 = vsel %vm31_vm0, %v16_v25, 0  ;;  %v984_v54 = vand.u32 4294901760, %v75_v45 }
  0x13   :  { %757 = vmatpush.msra.mxu3 %v263_v50  ;;  %353 = vmatpush.msrb.mxu2 %v815_v18  ;;  %v112_v2 = vand.u32 4294901760, %v111_v0  ;;  %v24_v18 = vld [vmem:[%s1223_s0 + $0x68] sm:$0xff]  ;;  %v126_v20 = vand.u32 4294901760, %v922_v13  ;;  %v191_v22 = vsub.f32 %v910_v10, %v190_v16  ;;  %v953_v29 = vsub.f32 %v45_v17, %v937_v21 }
  0x14   :  { %298 = vmatmul.f32.vlgmr.msra.gmra.mxu3 %v809_v15  ;;  %264 = vmatpush.msra.mxu1 %v263_v50  ;;  %v965_v40 = vand.u32 4294901760, %v48_v36  ;;  %v51_v56 = vsel %vm31_vm0, %v17_v46, 0  ;;  %v78_v8 = vsel %vm31_vm0, %v26_v57, 0 }
  0x15   :  { %448 = vmatpush.msrb.mxu3 %v782_v3  ;;  %266 = vmatmul.f32.vlgmr.msra.gmra.mxu1 %v830_v28  ;;  %v192_v31 = vand.u32 4294901760, %v191_v22  ;;  %v134_v39 = vand.u32 4294901760, %v953_v29  ;;  %v993_v0 = vand.u32 4294901760, %v51_v56 }
  0x16   :  { %658 = vmatpush.msrb.mxu1 %v782_v3  ;;  %579 = vmatpush.msrb.mxu0 %v261_v26  ;;  %v69_v3 = vsel %vm31_vm0, %v23_v1, 0  ;;  %v127_v26 = vsub.f32 %v922_v13, %v126_v20  ;;  %v981_v48 = vsub.f32 %v48_v36, %v965_v40 }
  0x17   :  { %177 = vmatmul.f32.gmra.mxu2 %v176_v60  ;;  %450 = vmatpush.msrb.mxu3 %v784_v4  ;;  %v135_v47 = vsub.f32 %v953_v29, %v134_v39 }
  0x18   :  { %660 = vmatpush.msrb.mxu1 %v784_v4  ;;  %v926_v4 = vand.u32 4294901760, %v69_v3  ;;  %v128_v38 = vand.u32 4294901760, %v127_v26  ;;  %v142_v63 = vand.u32 4294901760, %v981_v48 }
  0x19   :  { %452 = vmatpush.msrb.mxu3 %v786_v5  ;;  %v136_v60 = vand.u32 4294901760, %v135_v47 }
  0x1a   :  { %113 = vmatmul.f32.gmra.mxu0 %v112_v2  ;;  %662 = vmatpush.msrb.mxu1 %v786_v5  ;;  %v120_v5 = vand.u32 4294901760, %v119_v12  ;;  %v943_v24 = vsub.f32 %v69_v3, %v926_v4  ;;  %v999_v2 = vsub.f32 %v75_v45, %v984_v54  ;;  %v18_v3 = vld [vmem:[%s1223_s0 + $0x38] sm:$0xff]  ;;  %v143_v11 = vsub.f32 %v981_v48, %v142_v63 }
  0x1b   :  { %454 = vmatpush.msrb.mxu3 %v797_v9  ;;  %v149_v12 = vsub.f32 %v51_v56, %v993_v0 }
  0x1c   :  { %302 = vmatmul.f32.gmra.mxu3 %v817_v19  ;;  %664 = vmatpush.msrb.mxu1 %v797_v9  ;;  %v72_v9 = vsel %vm31_vm0, %v24_v18, 0  ;;  %v198_v32 = vand.u32 4294901760, %v943_v24  ;;  %v214_v17 = vand.u32 4294901760, %v999_v2  ;;  %v1010_v18 = vand.u32 4294901760, %v78_v8 }
  0x1d   :  { %270 = vmatmul.f32.gmra.mxu1 %v864_v49  ;;  %v956_v33 = vand.u32 4294901760, %v72_v9  ;;  %v144_v22 = vand.u32 4294901760, %v143_v11 }
  0x1e   :  { %v199_v43 = vsub.f32 %v943_v24, %v198_v32  ;;  %v215_v26 = vsub.f32 %v999_v2, %v214_v17 }
  0x1f   :  { %185 = vmatmul.f32.gmra.mxu2 %v184_v14  ;;  %v971_v44 = vsub.f32 %v72_v9, %v956_v33  ;;  %v150_v9 = vand.u32 4294901760, %v149_v12 }
  0x20   :  { %v200_v50 = vand.u32 4294901760, %v199_v43 }
  0x21   :  { %v206_v51 = vand.u32 4294901760, %v971_v44  ;;  %v151_v36 = vsub.f32 %v149_v12, %v150_v9 }
  0x22   :  { %121 = vmatmul.f32.gmra.mxu0 %v120_v5  ;;  %v54_v5 = vsel %vm31_vm0, %v18_v3, 0 }
  0x23   :  { %v207_v1 = vsub.f32 %v971_v44, %v206_v51  ;;  %v156_v25 = vand.u32 4294901760, %v54_v5  ;;  %v152_v45 = vand.u32 4294901760, %v151_v36 }
  0x24   :  { %306 = vmatmul.f32.gmra.mxu3 %v841_v35 }
  0x25   :  { %274 = vmatmul.f32.gmra.mxu1 %v872_v53  ;;  %v208_v14 = vand.u32 4294901760, %v207_v1  ;;  %v157_v37 = vsub.f32 %v54_v5, %v156_v25 }
  0x27   :  { %193 = vmatmul.f32.gmra.mxu2 %v192_v31  ;;  %v1019_v31 = vsub.f32 %v78_v8, %v1010_v18  ;;  %v158_v46 = vand.u32 4294901760, %v157_v37 }
  0x29   :  { %v222_v43 = vand.u32 4294901760, %v1019_v31 }
  0x2a   :  { %129 = vmatmul.f32.gmra.mxu0 %v128_v38  ;;  %v216_v38 = vand.u32 4294901760, %v215_v26 }
  0x2b   :  { %v223_v47 = vsub.f32 %v1019_v31, %v222_v43 }
  0x2c   :  { %310 = vmatmul.f32.gmra.mxu3 %v886_v62 }
  0x2d   :  { %278 = vmatmul.f32.gmra.mxu1 %v901_v7  ;;  %v224_v56 = vand.u32 4294901760, %v223_v47 }
  0x2f   :  { %201 = vmatmul.f32.gmra.mxu2 %v200_v50  ;;  %v159_v50 = vsub.f32 %v157_v37, %v158_v46 }
  0x31   :  { %v160_v57 = vand.u32 4294901760, %v159_v50 }
  0x32   :  { %137 = vmatmul.f32.gmra.mxu0 %v136_v60 }
  0x34   :  { %314 = vmatmul.f32.gmra.mxu3 %v926_v4 }
  0x35   :  { %282 = vmatmul.f32.gmra.mxu1 %v937_v21 }
  0x37   :  { %209 = vmatmul.f32.gmra.mxu2 %v208_v14 }
  0x3a   :  { %145 = vmatmul.f32.gmra.mxu0 %v144_v22 }
  0x3c   :  { %318 = vmatmul.f32.gmra.mxu3 %v956_v33 }
  0x3d   :  { %286 = vmatmul.f32.gmra.mxu1 %v965_v40 }
  0x3f   :  { %217 = vmatmul.f32.gmra.mxu2 %v216_v38 }
  0x42   :  { %153 = vmatmul.f32.gmra.mxu0 %v152_v45 }
  0x44   :  { %322 = vmatmul.f32.gmra.mxu3 %v984_v54 }
  0x45   :  { %290 = vmatmul.f32.gmra.mxu1 %v993_v0 }
  0x47   :  { %225 = vmatmul.f32.gmra.mxu2 %v224_v56 }
  0x4a   :  { %161 = vmatmul.f32.gmra.mxu0 %v160_v57 }
  0x4c   :  { %326 = vmatmul.f32.gmra.mxu3 %v1010_v18 }
  0x4d   :  { %294 = vmatmul.f32.gmra.mxu1 %v156_v25 }
  0x4f   :  { %356 = vmatmul.f32.vlgmr.msrb.gmra.mxu2 %v839_v34 }
  0x52   :  { %581 = vmatmul.f32.vlgmr.msrb.gmra.mxu0 %v830_v28 }
  0x54   :  { %458 = vmatmul.f32.vlgmr.msrb.gmra.mxu3 %v102_v42 }
  0x55   :  { %666 = vmatmul.f32.vlgmr.msrb.gmra.mxu1 %v830_v28 }
  0x57   :  { %361 = vmatmul.f32.gmra.mxu2 %v875_v55 }
  0x5a   :  { %585 = vmatmul.f32.gmra.mxu0 %v864_v49 }
  0x5c   :  { %464 = vmatmul.f32.gmra.mxu3 %v110_v58 }
  0x5d   :  { %670 = vmatmul.f32.gmra.mxu1 %v864_v49 }
  0x5f   :  { %366 = vmatmul.f32.gmra.mxu2 %v883_v59 }
  0x62   :  { %589 = vmatmul.f32.gmra.mxu0 %v872_v53 }
  0x64   :  { %470 = vmatmul.f32.gmra.mxu3 %v118_v6 }
  0x65   :  { %674 = vmatmul.f32.gmra.mxu1 %v872_v53 }
  0x67   :  { %371 = vmatmul.f32.gmra.mxu2 %v922_v13 }
  0x6a   :  { %593 = vmatmul.f32.gmra.mxu0 %v901_v7 }
  0x6c   :  { %476 = vmatmul.f32.gmra.mxu3 %v126_v20 }
  0x6d   :  { %678 = vmatmul.f32.gmra.mxu1 %v901_v7 }
  0x6f   :  { %376 = vmatmul.f32.gmra.mxu2 %v953_v29 }
  0x72   :  { %597 = vmatmul.f32.gmra.mxu0 %v937_v21 }
  0x74   :  { %482 = vmatmul.f32.gmra.mxu3 %v134_v39 }
  0x75   :  { %682 = vmatmul.f32.gmra.mxu1 %v937_v21 }
  0x77   :  { %381 = vmatmul.f32.gmra.mxu2 %v981_v48 }
  0x7a   :  { %601 = vmatmul.f32.gmra.mxu0 %v965_v40 }
  0x7c   :  { %488 = vmatmul.f32.gmra.mxu3 %v142_v63 }
  0x7d   :  { %686 = vmatmul.f32.gmra.mxu1 %v965_v40 }
  0x7f   :  { %386 = vmatmul.f32.gmra.mxu2 %v149_v12 }
  0x82   :  { %605 = vmatmul.f32.gmra.mxu0 %v993_v0 }
  0x84   :  { %494 = vmatmul.f32.gmra.mxu3 %v150_v9 }
  0x85   :  { %690 = vmatmul.f32.gmra.mxu1 %v993_v0 }
  0x87   :  { %391 = vmatmul.f32.gmra.mxu2 %v157_v37 }
  0x8a   :  { %609 = vmatmul.f32.gmra.mxu0 %v156_v25 }
  0x8c   :  { %500 = vmatmul.f32.gmra.mxu3 %v158_v46 }
  0x8d   :  { %694 = vmatmul.f32.gmra.mxu1 %v156_v25 }
  0x8f   :  { %396 = vmatmul.f32.gmra.mxu2 %v823_v23  ;;  %v1063_v28 = vpop.f32.mrf.mxu0 }
  0x92   :  { %v170_v34 = vpop.f32.mrf.mxu2  ;;  %v1065_v42 = vpop.f32.mrf.mxu1  ;;  %613 = vmatmul.f32.gmra.mxu0 %v809_v15 }
  0x93   :  { %v268_v11 = vadd.f32 %v1065_v42, %v1063_v28 }
  0x94   :  { %506 = vmatmul.f32.gmra.mxu3 %v166_v30 }
  0x95   :  { %698 = vmatmul.f32.gmra.mxu1 %v809_v15 }
  0x97   :  { %401 = vmatmul.f32.gmra.mxu2 %v828_v27  ;;  %v299_v49 = vpop.f32.mrf.mxu3  ;;  %v1072_v53 = vpop.f32.mrf.mxu0 }
  0x98   :  { %v1074_v55 = vadd.f32 %v299_v49, %v170_v34 }
  0x9a   :  { %v178_v58 = vpop.f32.mrf.mxu2  ;;  %v1076_v59 = vpop.f32.mrf.mxu1  ;;  %617 = vmatmul.f32.gmra.mxu0 %v817_v19 }
  0x9b   :  { %v272_v26 = vadd.f32 %v1076_v59, %v1072_v53 }
  0x9c   :  { %512 = vmatmul.f32.gmra.mxu3 %v174_v41 }
  0x9d   :  { %702 = vmatmul.f32.gmra.mxu1 %v817_v19 }
  0x9f   :  { %406 = vmatmul.f32.gmra.mxu2 %v870_v52  ;;  %v303_v15 = vpop.f32.mrf.mxu3  ;;  %v1083_v23 = vpop.f32.mrf.mxu0 }
  0xa0   :  { %v1085_v30 = vadd.f32 %v303_v15, %v178_v58 }
  0xa2   :  { %v186_v6 = vpop.f32.mrf.mxu2  ;;  %v1087_v7 = vpop.f32.mrf.mxu1  ;;  %621 = vmatmul.f32.gmra.mxu0 %v841_v35 }
  0xa3   :  { %v276_v47 = vadd.f32 %v1087_v7, %v1083_v23 }
  0xa4   :  { %518 = vmatmul.f32.gmra.mxu3 %v182_v61 }
  0xa5   :  { %706 = vmatmul.f32.gmra.mxu1 %v841_v35 }
  0xa7   :  { %411 = vmatmul.f32.gmra.mxu2 %v910_v10  ;;  %v307_v19 = vpop.f32.mrf.mxu3  ;;  %v1094_v27 = vpop.f32.mrf.mxu0 }
  0xa8   :  { %v1096_v41 = vadd.f32 %v307_v19, %v186_v6 }
  0xaa   :  { %v194_v13 = vpop.f32.mrf.mxu2  ;;  %v1098_v20 = vpop.f32.mrf.mxu1  ;;  %625 = vmatmul.f32.gmra.mxu0 %v886_v62 }
  0xab   :  { %v280_v58 = vadd.f32 %v1098_v20, %v1094_v27 }
  0xac   :  { %524 = vmatmul.f32.gmra.mxu3 %v190_v16 }
  0xad   :  { %710 = vmatmul.f32.gmra.mxu1 %v886_v62 }
  0xaf   :  { %416 = vmatmul.f32.gmra.mxu2 %v943_v24  ;;  %v311_v35 = vpop.f32.mrf.mxu3  ;;  %v1105_v52 = vpop.f32.mrf.mxu0 }
  0xb0   :  { %v1107_v61 = vadd.f32 %v311_v35, %v194_v13 }
  0xb2   :  { %v202_v21 = vpop.f32.mrf.mxu2  ;;  %v1109_v29 = vpop.f32.mrf.mxu1  ;;  %629 = vmatmul.f32.gmra.mxu0 %v926_v4 }
  0xb4   :  { %530 = vmatmul.f32.gmra.mxu3 %v198_v32 }
  0xb5   :  { %714 = vmatmul.f32.gmra.mxu1 %v926_v4 }
  0xb7   :  { %421 = vmatmul.f32.gmra.mxu2 %v971_v44  ;;  %v315_v62 = vpop.f32.mrf.mxu3  ;;  %v1116_v10 = vpop.f32.mrf.mxu0 }
  0xb8   :  { %v1118_v16 = vadd.f32 %v315_v62, %v202_v21  ;;  %v284_v21 = vadd.f32 %v1109_v29, %v1105_v52 }
  0xba   :  { %v210_v39 = vpop.f32.mrf.mxu2  ;;  %v1120_v40 = vpop.f32.mrf.mxu1  ;;  %633 = vmatmul.f32.gmra.mxu0 %v956_v33 }
  0xbc   :  { %536 = vmatmul.f32.gmra.mxu3 %v206_v51 }
  0xbd   :  { %718 = vmatmul.f32.gmra.mxu1 %v956_v33 }
  0xbf   :  { %426 = vmatmul.f32.gmra.mxu2 %v999_v2  ;;  %v319_v4 = vpop.f32.mrf.mxu3  ;;  %v1127_v24 = vpop.f32.mrf.mxu0 }
  0xc0   :  { %v1129_v32 = vadd.f32 %v319_v4, %v210_v39 }
  0xc2   :  { %v218_v48 = vpop.f32.mrf.mxu2  ;;  %v1131_v60 = vpop.f32.mrf.mxu1  ;;  %637 = vmatmul.f32.gmra.mxu0 %v984_v54 }
  0xc4   :  { %542 = vmatmul.f32.gmra.mxu3 %v214_v17 }
  0xc5   :  { %722 = vmatmul.f32.gmra.mxu1 %v984_v54 }
  0xc7   :  { %431 = vmatmul.f32.gmra.mxu2 %v1019_v31  ;;  %v323_v33 = vpop.f32.mrf.mxu3  ;;  %v1138_v44 = vpop.f32.mrf.mxu0 }
  0xc8   :  { %v1140_v51 = vadd.f32 %v323_v33, %v218_v48 }
  0xca   :  { %v226_v63 = vpop.f32.mrf.mxu2  ;;  %v1142_v0 = vpop.f32.mrf.mxu1  ;;  %641 = vmatmul.f32.gmra.mxu0 %v1010_v18 }
  0xcc   :  { %548 = vmatmul.f32.gmra.mxu3 %v222_v43 }
  0xcd   :  { %726 = vmatmul.f32.gmra.mxu1 %v1010_v18 }
  0xcf   :  { %v327_v1 = vpop.f32.mrf.mxu3  ;;  %v582_v2 = vpop.f32.mrf.mxu0 }
  0xd0   :  { %v1148_v54 = vadd.f32 %v327_v1, %v226_v63  ;;  %v288_v1 = vadd.f32 %v1120_v40, %v1116_v10 }
  0xd2   :  { %v357_v8 = vpop.f32.mrf.mxu2  ;;  %v667_v3 = vpop.f32.mrf.mxu1 }
  0xd3   :  { %v358_v12 = vadd.f32 %v357_v8, %v268_v11 }
  0xd7   :  { %v459_v14 = vpop.f32.mrf.mxu3  ;;  %v586_v17 = vpop.f32.mrf.mxu0 }
  0xd8   :  { %v460_v5 = vadd.f32 %v459_v14, %v358_v12 }
  0xda   :  { %v362_v22 = vpop.f32.mrf.mxu2  ;;  %v583_v9 = vadd.f32 %v582_v2, %v460_v5  ;;  %v671_v25 = vpop.f32.mrf.mxu1 }
  0xdb   :  { %v363_v31 = vadd.f32 %v362_v22, %v272_v26 }
  0xdc   :  { %v668_v18 = vadd.f32 %v667_v3, %v583_v9 }
  0xde   :  { %730 = vst [vmem:[%s1224_s2] sm:$0xff] %v668_v18 }
  0xdf   :  { %v465_v36 = vpop.f32.mrf.mxu3  ;;  %v590_v37 = vpop.f32.mrf.mxu0 }
  0xe0   :  { %v466_v38 = vadd.f32 %v465_v36, %v363_v31  ;;  %v296_v31 = vadd.f32 %v1142_v0, %v1138_v44 }
  0xe2   :  { %v367_v43 = vpop.f32.mrf.mxu2  ;;  %v587_v45 = vadd.f32 %v586_v17, %v466_v38  ;;  %v675_v46 = vpop.f32.mrf.mxu1  ;;  %v292_v17 = vadd.f32 %v1131_v60, %v1127_v24 }
  0xe3   :  { %v368_v56 = vadd.f32 %v367_v43, %v276_v47 }
  0xe4   :  { %v672_v50 = vadd.f32 %v671_v25, %v587_v45 }
  0xe6   :  { %731 = vst [vmem:[%s1224_s2 + $0x8] sm:$0xff] %v672_v50 }
  0xe7   :  { %v471_v57 = vpop.f32.mrf.mxu3  ;;  %v594_v28 = vpop.f32.mrf.mxu0 }
  0xe8   :  { %v472_v34 = vadd.f32 %v471_v57, %v368_v56 }
  0xea   :  { %v372_v42 = vpop.f32.mrf.mxu2  ;;  %v591_v49 = vadd.f32 %v590_v37, %v472_v34  ;;  %v679_v53 = vpop.f32.mrf.mxu1 }
  0xeb   :  { %v373_v15 = vadd.f32 %v372_v42, %v280_v58 }
  0xec   :  { %v676_v59 = vadd.f32 %v675_v46, %v591_v49 }
  0xee   :  { %732 = vst [vmem:[%s1224_s2 + $0x10] sm:$0xff] %v676_v59 }
  0xef   :  { %v477_v23 = vpop.f32.mrf.mxu3  ;;  %v598_v6 = vpop.f32.mrf.mxu0 }
  0xf0   :  { %v478_v7 = vadd.f32 %v477_v23, %v373_v15 }
  0xf2   :  { %v377_v19 = vpop.f32.mrf.mxu2  ;;  %v595_v13 = vadd.f32 %v594_v28, %v478_v7  ;;  %v683_v35 = vpop.f32.mrf.mxu1 }
  0xf3   :  { %v378_v39 = vadd.f32 %v377_v19, %v284_v21 }
  0xf4   :  { %v680_v62 = vadd.f32 %v679_v53, %v595_v13 }
  0xf6   :  { %733 = vst [vmem:[%s1224_s2 + $0x18] sm:$0xff] %v680_v62 }
  0xf7   :  { %v483_v27 = vpop.f32.mrf.mxu3  ;;  %v602_v20 = vpop.f32.mrf.mxu0 }
  0xf8   :  { %v484_v4 = vadd.f32 %v483_v27, %v378_v39 }
  0xfa   :  { %v382_v48 = vpop.f32.mrf.mxu2  ;;  %v599_v33 = vadd.f32 %v598_v6, %v484_v4  ;;  %v687_v63 = vpop.f32.mrf.mxu1 }
  0xfb   :  { %v383_v8 = vadd.f32 %v382_v48, %v288_v1 }
  0xfc   :  { %v684_v2 = vadd.f32 %v683_v35, %v599_v33 }
  0xfe   :  { %734 = vst [vmem:[%s1224_s2 + $0x20] sm:$0xff] %v684_v2 }
  0xff   :  { %v489_v52 = vpop.f32.mrf.mxu3  ;;  %v606_v29 = vpop.f32.mrf.mxu0 }
 0x100   :  { %v490_v3 = vadd.f32 %v489_v52, %v383_v8 }
 0x102   :  { %v387_v11 = vpop.f32.mrf.mxu2  ;;  %v603_v12 = vadd.f32 %v602_v20, %v490_v3  ;;  %v691_v14 = vpop.f32.mrf.mxu1 }
 0x103   :  { %v388_v22 = vadd.f32 %v387_v11, %v292_v17 }
 0x104   :  { %v688_v5 = vadd.f32 %v687_v63, %v603_v12 }
 0x106   :  { %735 = vst [vmem:[%s1224_s2 + $0x28] sm:$0xff] %v688_v5 }
 0x107   :  { %v495_v10 = vpop.f32.mrf.mxu3  ;;  %v610_v40 = vpop.f32.mrf.mxu0 }
 0x108   :  { %v496_v9 = vadd.f32 %v495_v10, %v388_v22 }
 0x10a   :  { %v392_v25 = vpop.f32.mrf.mxu2  ;;  %v607_v26 = vadd.f32 %v606_v29, %v496_v9  ;;  %v695_v18 = vpop.f32.mrf.mxu1 }
 0x10b   :  { %v393_v37 = vadd.f32 %v392_v25, %v296_v31 }
 0x10c   :  { %v692_v36 = vadd.f32 %v691_v14, %v607_v26 }
 0x10e   :  { %736 = vst [vmem:[%s1224_s2 + $0x30] sm:$0xff] %v692_v36 }
 0x10f   :  { %v501_v24 = vpop.f32.mrf.mxu3  ;;  %v614_v60 = vpop.f32.mrf.mxu0 }
 0x110   :  { %v502_v38 = vadd.f32 %v501_v24, %v393_v37 }
 0x112   :  { %v397_v43 = vpop.f32.mrf.mxu2  ;;  %v611_v45 = vadd.f32 %v610_v40, %v502_v38  ;;  %v699_v46 = vpop.f32.mrf.mxu1 }
 0x113   :  { %v398_v50 = vadd.f32 %v397_v43, %v1074_v55 }
 0x114   :  { %v696_v47 = vadd.f32 %v695_v18, %v611_v45 }
 0x116   :  { %737 = vst [vmem:[%s1224_s2 + $0x38] sm:$0xff] %v696_v47 }
 0x117   :  { %v507_v44 = vpop.f32.mrf.mxu3  ;;  %v618_v0 = vpop.f32.mrf.mxu0 }
 0x118   :  { %v508_v56 = vadd.f32 %v507_v44, %v398_v50 }
 0x11a   :  { %v402_v57 = vpop.f32.mrf.mxu2  ;;  %v615_v28 = vadd.f32 %v614_v60, %v508_v56  ;;  %v703_v34 = vpop.f32.mrf.mxu1 }
 0x11b   :  { %v403_v49 = vadd.f32 %v402_v57, %v1085_v30 }
 0x11c   :  { %v700_v42 = vadd.f32 %v699_v46, %v615_v28 }
 0x11e   :  { %738 = vst [vmem:[%s1224_s2 + $0x40] sm:$0xff] %v700_v42 }
 0x11f   :  { %v513_v53 = vpop.f32.mrf.mxu3  ;;  %v622_v58 = vpop.f32.mrf.mxu0 }
 0x120   :  { %v514_v55 = vadd.f32 %v513_v53, %v403_v49 }
 0x122   :  { %v407_v59 = vpop.f32.mrf.mxu2  ;;  %v619_v15 = vadd.f32 %v618_v0, %v514_v55  ;;  %v707_v23 = vpop.f32.mrf.mxu1 }
 0x123   :  { %v408_v7 = vadd.f32 %v407_v59, %v1096_v41 }
 0x124   :  { %v704_v6 = vadd.f32 %v703_v34, %v619_v15 }
 0x126   :  { %739 = vst [vmem:[%s1224_s2 + $0x48] sm:$0xff] %v704_v6 }
 0x127   :  { %v519_v19 = vpop.f32.mrf.mxu3  ;;  %v626_v13 = vpop.f32.mrf.mxu0 }
 0x128   :  { %v520_v30 = vadd.f32 %v519_v19, %v408_v7 }
 0x12a   :  { %v412_v35 = vpop.f32.mrf.mxu2  ;;  %v623_v21 = vadd.f32 %v622_v58, %v520_v30  ;;  %v711_v62 = vpop.f32.mrf.mxu1 }
 0x12b   :  { %v413_v27 = vadd.f32 %v412_v35, %v1107_v61 }
 0x12c   :  { %v708_v39 = vadd.f32 %v707_v23, %v623_v21 }
 0x12e   :  { %740 = vst [vmem:[%s1224_s2 + $0x50] sm:$0xff] %v708_v39 }
 0x12f   :  { %v525_v20 = vpop.f32.mrf.mxu3  ;;  %v630_v41 = vpop.f32.mrf.mxu0 }
 0x130   :  { %v526_v4 = vadd.f32 %v525_v20, %v413_v27 }
 0x132   :  { %v417_v48 = vpop.f32.mrf.mxu2  ;;  %v627_v33 = vadd.f32 %v626_v13, %v526_v4  ;;  %v715_v63 = vpop.f32.mrf.mxu1 }
 0x133   :  { %v418_v2 = vadd.f32 %v417_v48, %v1118_v16 }
 0x134   :  { %v712_v1 = vadd.f32 %v711_v62, %v627_v33 }
 0x136   :  { %741 = vst [vmem:[%s1224_s2 + $0x58] sm:$0xff] %v712_v1 }
 0x137   :  { %v531_v8 = vpop.f32.mrf.mxu3  ;;  %v634_v3 = vpop.f32.mrf.mxu0 }
 0x138   :  { %v532_v52 = vadd.f32 %v531_v8, %v418_v2 }
 0x13a   :  { %v422_v61 = vpop.f32.mrf.mxu2  ;;  %v631_v29 = vadd.f32 %v630_v41, %v532_v52  ;;  %v719_v12 = vpop.f32.mrf.mxu1 }
 0x13b   :  { %v423_v14 = vadd.f32 %v422_v61, %v1129_v32 }
 0x13c   :  { %v716_v11 = vadd.f32 %v715_v63, %v631_v29 }
 0x13e   :  { %742 = vst [vmem:[%s1224_s2 + $0x60] sm:$0xff] %v716_v11 }
 0x13f   :  { %v537_v17 = vpop.f32.mrf.mxu3  ;;  %v638_v40 = vpop.f32.mrf.mxu0 }
 0x140   :  { %v538_v5 = vadd.f32 %v537_v17, %v423_v14 }
 0x142   :  { %v427_v16 = vpop.f32.mrf.mxu2  ;;  %v635_v22 = vadd.f32 %v634_v3, %v538_v5  ;;  %v723_v26 = vpop.f32.mrf.mxu1 }
 0x143   :  { %v428_v9 = vadd.f32 %v427_v16, %v1140_v51 }
 0x144   :  { %v720_v10 = vadd.f32 %v719_v12, %v635_v22 }
 0x146   :  { %743 = vst [vmem:[%s1224_s2 + $0x68] sm:$0xff] %v720_v10 }
 0x147   :  { %v543_v25 = vpop.f32.mrf.mxu3  ;;  %v642_v60 = vpop.f32.mrf.mxu0 }
 0x148   :  { %v544_v18 = vadd.f32 %v543_v25, %v428_v9 }
 0x14a   :  { %v639_v32 = vadd.f32 %v638_v40, %v544_v18  ;;  %v432_v31 = vpop.f32.mrf.mxu2  ;;  %v727_v51 = vpop.f32.mrf.mxu1 }
 0x14b   :  { %v433_v37 = vadd.f32 %v432_v31, %v1148_v54 }
 0x14c   :  { %v724_v36 = vadd.f32 %v723_v26, %v639_v32 }
 0x14e   :  { %744 = vst [vmem:[%s1224_s2 + $0x70] sm:$0xff] %v724_v36 }
 0x14f   :  { %v549_v24 = vpop.f32.mrf.mxu3 }
 0x150   :  { %v550_v38 = vadd.f32 %v549_v24, %v433_v37 }
 0x152   :  { %v643_v43 = vadd.f32 %v642_v60, %v550_v38 }
 0x154   :  { %v728_v45 = vadd.f32 %v727_v51, %v643_v43 }
 0x156   :  { %745 = vst [vmem:[%s1224_s2 + $0x78] sm:$0xff] %v728_v45 }

// kernel: gcn_conv_fixed_w.3
= control target key start
LH: loop header
LB: loop body
LE: loop exit
PB: predicated region body
PF: predicated region fallthrough
CT: control target
= control target key end

     0   :  { %s1702_s1 = inlined_call_operand.vmem [shape: f32[128,128], index: 1, kind: input, shape index: {}]   ;;  %s1703_s0 = inlined_call_operand.vmem [shape: f32[128,128], index: 0, kind: input, shape index: {}]   ;;  %s1704_s2 = inlined_call_operand.vmem [shape: f32[128,128], index: 2, kind: output, shape index: {}]  }
   0x1   :  { %v78_v0 = vld [vmem:[%s1702_s1 + $0x78] sm:$0xff]  ;;  %v77_v1 = vld [vmem:[%s1702_s1 + $0x70] sm:$0xff]  ;;  %v76_v2 = vld [vmem:[%s1702_s1 + $0x68] sm:$0xff] }
   0x2   :  { %v1012_v3 = vand.u32 4294901760, %v78_v0  ;;  %v1014_v4 = vand.u32 4294901760, %v77_v1  ;;  %v1016_v5 = vand.u32 4294901760, %v76_v2  ;;  %v75_v6 = vld [vmem:[%s1702_s1 + $0x60] sm:$0xff]  ;;  %v74_v7 = vld [vmem:[%s1702_s1 + $0x58] sm:$0xff]  ;;  %v73_v8 = vld [vmem:[%s1702_s1 + $0x50] sm:$0xff] }
   0x3   :  { %v1027_v9 = vand.u32 4294901760, %v75_v6  ;;  %v1029_v10 = vand.u32 4294901760, %v74_v7  ;;  %v1031_v11 = vand.u32 4294901760, %v73_v8  ;;  %v72_v12 = vld [vmem:[%s1702_s1 + $0x48] sm:$0xff]  ;;  %v71_v13 = vld [vmem:[%s1702_s1 + $0x40] sm:$0xff]  ;;  %v70_v17 = vld [vmem:[%s1702_s1 + $0x38] sm:$0xff] }
   0x4   :  { %956 = vmatpush.msra.mxu2 %v1012_v3  ;;  %v1041_v14 = vsub.f32 %v78_v0, %v1012_v3  ;;  %v1044_v15 = vsub.f32 %v77_v1, %v1014_v4  ;;  %v1047_v16 = vsub.f32 %v76_v2, %v1016_v5  ;;  %80 = vmatpush.msra.mxu0 %v1012_v3  ;;  %v1053_v18 = vand.u32 4294901760, %v72_v12  ;;  %v69_v25 = vld [vmem:[%s1702_s1 + $0x30] sm:$0xff]  ;;  %v68_v33 = vld [vmem:[%s1702_s1 + $0x28] sm:$0xff]  ;;  %v67_v42 = vld [vmem:[%s1702_s1 + $0x20] sm:$0xff] }
   0x5   :  { %v1056_v19 = vsub.f32 %v75_v6, %v1027_v9  ;;  %v1059_v20 = vsub.f32 %v74_v7, %v1029_v10  ;;  %v1065_v24 = vand.u32 4294901760, %v71_v13  ;;  %v1072_v27 = vand.u32 4294901760, %v70_v17  ;;  %v55_v47 = vld [vmem:[%s1703_s0 + $0x40] sm:$0xff]  ;;  %v66_v49 = vld [vmem:[%s1702_s1 + $0x18] sm:$0xff]  ;;  %v65_v55 = vld [vmem:[%s1702_s1 + $0x10] sm:$0xff] }
   0x6   :  { %957 = vmatpush.msra.mxu2 %v1014_v4  ;;  %v242_v21 = vand.u32 4294901760, %v1041_v14  ;;  %v248_v22 = vand.u32 4294901760, %v1044_v15  ;;  %v254_v23 = vand.u32 4294901760, %v1047_v16  ;;  %82 = vmatpush.msra.mxu0 %v1014_v4  ;;  %v1075_v28 = vsub.f32 %v73_v8, %v1031_v11  ;;  %v64_v62 = vld [vmem:[%s1702_s1 + $0x8] sm:$0xff]  ;;  %v63_v2 = vld [vmem:[%s1702_s1] sm:$0xff] }
   0x7   :  { %v260_v26 = vand.u32 4294901760, %v1056_v19  ;;  %v266_v32 = vand.u32 4294901760, %v1059_v20  ;;  %v1095_v35 = vand.u32 4294901760, %v69_v25  ;;  %v1098_v36 = vsub.f32 %v72_v12, %v1053_v18  ;;  %v47_v12 = vld [vmem:[%s1703_s0] sm:$0xff] }
   0x8   :  { %958 = vmatpush.msra.mxu2 %v1016_v5  ;;  %v243_v29 = vsub.f32 %v1041_v14, %v242_v21  ;;  %v249_v30 = vsub.f32 %v1044_v15, %v248_v22  ;;  %v255_v31 = vsub.f32 %v1047_v16, %v254_v23  ;;  %84 = vmatpush.msra.mxu0 %v1016_v5  ;;  %v272_v39 = vand.u32 4294901760, %v1075_v28 }
   0x9   :  { %v261_v34 = vsub.f32 %v1056_v19, %v260_v26  ;;  %v1104_v40 = vsub.f32 %v71_v13, %v1065_v24  ;;  %v1106_v41 = vand.u32 4294901760, %v68_v33  ;;  %v267_v44 = vsub.f32 %v1059_v20, %v266_v32 }
   0xa   :  { %959 = vmatpush.msra.mxu2 %v1027_v9  ;;  %v244_v37 = vand.u32 4294901760, %v243_v29  ;;  %v250_v38 = vand.u32 4294901760, %v249_v30  ;;  %86 = vmatpush.msra.mxu0 %v1027_v9  ;;  %v256_v43 = vand.u32 4294901760, %v255_v31  ;;  %v1715_v45 = vand.u32 4294901760, %v1098_v36  ;;  %v56_v30 = vld [vmem:[%s1703_s0 + $0x48] sm:$0xff] }
   0xb   :  { %v1117_v46 = vsub.f32 %v70_v17, %v1072_v27  ;;  %v1714_v48 = vand.u32 4294901760, %v1104_v40  ;;  %v262_v50 = vand.u32 4294901760, %v261_v34  ;;  %v273_v51 = vsub.f32 %v1075_v28, %v272_v39 }
   0xc   :  { %960 = vmatpush.msra.mxu2 %v1029_v10  ;;  %972 = vmatpush.msra.mxu3 %v244_v37  ;;  %v1131_v52 = vand.u32 4294901760, %v67_v42  ;;  %v1134_v53 = vsub.f32 %v69_v25, %v1095_v35  ;;  %v1141_v56 = vand.u32 4294901760, %v55_v47  ;;  %v268_v57 = vand.u32 4294901760, %v267_v44 }
   0xd   :  { %245 = vmatpush.msra.mxu1 %v244_v37  ;;  %88 = vmatpush.msra.mxu0 %v1029_v10  ;;  %v1709_v54 = vand.u32 4294901760, %v1117_v46  ;;  %v279_v58 = vsub.f32 %v1098_v36, %v1715_v45  ;;  %v1147_v59 = vand.u32 4294901760, %v66_v49  ;;  %v1150_v60 = vsub.f32 %v68_v33, %v1106_v41 }
   0xe   :  { %961 = vmatpush.msra.mxu2 %v1031_v11  ;;  %973 = vmatpush.msra.mxu3 %v250_v38  ;;  %v285_v61 = vsub.f32 %v1104_v40, %v1714_v48  ;;  %v274_v63 = vand.u32 4294901760, %v273_v51  ;;  %v1160_v0 = vand.u32 4294901760, %v65_v55  ;;  %v1708_v1 = vand.u32 4294901760, %v1134_v53 }
   0xf   :  { %251 = vmatpush.msra.mxu1 %v250_v38  ;;  %90 = vmatpush.msra.mxu0 %v1031_v11  ;;  %v1167_v6 = vsub.f32 %v67_v42, %v1131_v52  ;;  %v291_v7 = vsub.f32 %v1117_v46, %v1709_v54  ;;  %v1174_v8 = vsub.f32 %v55_v47, %v1141_v56  ;;  %v280_v13 = vand.u32 4294901760, %v279_v58 }
  0x10   :  { %962 = vmatpush.msra.mxu2 %v1053_v18  ;;  %974 = vmatpush.msra.mxu3 %v256_v43  ;;  %v1180_v17 = vand.u32 4294901760, %v64_v62  ;;  %v1707_v25 = vand.u32 4294901760, %v1150_v60  ;;  %v1184_v29 = vsub.f32 %v66_v49, %v1147_v59  ;;  %v286_v31 = vand.u32 4294901760, %v285_v61 }
  0x11   :  { %257 = vmatpush.msra.mxu1 %v256_v43  ;;  %92 = vmatpush.msra.mxu0 %v1053_v18  ;;  %v1189_v33 = vand.u32 4294901760, %v63_v2  ;;  %v297_v34 = vsub.f32 %v1134_v53, %v1708_v1  ;;  %v1705_v37 = vand.u32 4294901760, %v1167_v6  ;;  %v1198_v38 = vsub.f32 %v65_v55, %v1160_v0 }
  0x12   :  { %963 = vmatpush.msra.mxu2 %v1065_v24  ;;  %975 = vmatpush.msra.mxu3 %v262_v50  ;;  %v1200_v42 = vand.u32 4294901760, %v47_v12  ;;  %v292_v43 = vand.u32 4294901760, %v291_v7  ;;  %v1706_v44 = vand.u32 4294901760, %v1174_v8  ;;  %v1204_v47 = vand.u32 4294901760, %v56_v30 }
  0x13   :  { %263 = vmatpush.msra.mxu1 %v262_v50  ;;  %94 = vmatpush.msra.mxu0 %v1065_v24  ;;  %v303_v49 = vsub.f32 %v1150_v60, %v1707_v25  ;;  %v1710_v50 = vand.u32 4294901760, %v1184_v29  ;;  %v1212_v51 = vsub.f32 %v64_v62, %v1180_v17  ;;  %v298_v58 = vand.u32 4294901760, %v297_v34  ;;  %v57_v34 = vld [vmem:[%s1703_s0 + $0x50] sm:$0xff] }
  0x14   :  { %964 = vmatpush.msra.mxu2 %v1072_v27  ;;  %976 = vmatpush.msra.mxu3 %v268_v57  ;;  %v1215_v55 = vsub.f32 %v47_v12, %v1200_v42  ;;  %v309_v61 = vsub.f32 %v1167_v6, %v1705_v37  ;;  %v1711_v62 = vand.u32 4294901760, %v1198_v38  ;;  %v178_v7 = vsub.f32 %v1174_v8, %v1706_v44 }
  0x15   :  { %269 = vmatpush.msra.mxu1 %v268_v57  ;;  %96 = vmatpush.msra.mxu0 %v1072_v27  ;;  %v48_v57 = vld [vmem:[%s1703_s0 + $0x8] sm:$0xff]  ;;  %v1234_v12 = vsub.f32 %v56_v30, %v1204_v47  ;;  %v1713_v44 = vand.u32 4294901760, %v1212_v51 }
  0x16   :  { %965 = vmatpush.msra.mxu2 %v1095_v35  ;;  %977 = vmatpush.msra.mxu3 %v274_v63  ;;  %v1240_v37 = vand.u32 4294901760, %v48_v57  ;;  %v310_v30 = vand.u32 4294901760, %v309_v61  ;;  %v321_v25 = vsub.f32 %v1198_v38, %v1711_v62  ;;  %v179_v54 = vand.u32 4294901760, %v178_v7 }
  0x17   :  { %275 = vmatpush.msra.mxu1 %v274_v63  ;;  %98 = vmatpush.msra.mxu0 %v1095_v35  ;;  %v1227_v63 = vsub.f32 %v63_v2, %v1189_v33  ;;  %v304_v2 = vand.u32 4294901760, %v303_v49  ;;  %v1253_v49 = vand.u32 4294901760, %v57_v34  ;;  %v327_v7 = vsub.f32 %v1212_v51, %v1713_v44 }
  0x18   :  { %966 = vmatpush.msra.mxu2 %v1106_v41  ;;  %978 = vmatpush.msra.mxu3 %v280_v13  ;;  %v1261_v61 = vsub.f32 %v48_v57, %v1240_v37  ;;  %v322_v57 = vand.u32 4294901760, %v321_v25  ;;  %v58_v25 = vld [vmem:[%s1703_s0 + $0x58] sm:$0xff] }
  0x19   :  { %281 = vmatpush.msra.mxu1 %v280_v13  ;;  %100 = vmatpush.msra.mxu0 %v1106_v41  ;;  %v1712_v13 = vand.u32 4294901760, %v1215_v55  ;;  %v1716_v1 = vand.u32 4294901760, %v1227_v63 }
  0x1a   :  { %967 = vmatpush.msra.mxu2 %v1131_v52  ;;  %979 = vmatpush.msra.mxu3 %v286_v31  ;;  %v121_v48 = vand.u32 4294901760, %v1261_v61 }
  0x1b   :  { %287 = vmatpush.msra.mxu1 %v286_v31  ;;  %102 = vmatpush.msra.mxu0 %v1131_v52  ;;  %v315_v31 = vsub.f32 %v1184_v29, %v1710_v50  ;;  %v1717_v50 = vand.u32 4294901760, %v1234_v12 }
  0x1c   :  { %968 = vmatpush.msra.mxu2 %v1147_v59  ;;  %980 = vmatpush.msra.mxu3 %v292_v43 }
  0x1d   :  { %293 = vmatpush.msra.mxu1 %v292_v43  ;;  %104 = vmatpush.msra.mxu0 %v1147_v59  ;;  %v114_v43 = vsub.f32 %v1215_v55, %v1712_v13  ;;  %v316_v62 = vand.u32 4294901760, %v315_v31  ;;  %v333_v13 = vsub.f32 %v1227_v63, %v1716_v1  ;;  %v1276_v31 = vsub.f32 %v57_v34, %v1253_v49 }
  0x1e   :  { %969 = vmatpush.msra.mxu2 %v1160_v0  ;;  %981 = vmatpush.msra.mxu3 %v298_v58  ;;  %v186_v44 = vsub.f32 %v1234_v12, %v1717_v50  ;;  %v328_v1 = vand.u32 4294901760, %v327_v7  ;;  %v1290_v34 = vand.u32 4294901760, %v58_v25  ;;  %v122_v7 = vsub.f32 %v1261_v61, %v121_v48 }
  0x1f   :  { %299 = vmatpush.msra.mxu1 %v298_v58  ;;  %106 = vmatpush.msra.mxu0 %v1160_v0  ;;  %v49_v58 = vld [vmem:[%s1703_s0 + $0x10] sm:$0xff] }
  0x20   :  { %970 = vmatpush.msra.mxu2 %v1180_v17  ;;  %982 = vmatpush.msra.mxu3 %v304_v2  ;;  %v1285_v45 = vand.u32 4294901760, %v49_v58 }
  0x21   :  { %305 = vmatpush.msra.mxu1 %v304_v2  ;;  %108 = vmatpush.msra.mxu0 %v1180_v17  ;;  %v115_v2 = vand.u32 4294901760, %v114_v43  ;;  %v193_v43 = vand.u32 4294901760, %v1276_v31 }
  0x22   :  { %971 = vmatpush.msra.mxu2 %v1189_v33  ;;  %983 = vmatpush.msra.mxu3 %v310_v30  ;;  %v1297_v50 = vsub.f32 %v49_v58, %v1285_v45  ;;  %v123_v58 = vand.u32 4294901760, %v122_v7 }
  0x23   :  { %180 = vmatmul.f32.vlgmr.msra.gmra.mxu2 %v179_v54  ;;  %311 = vmatpush.msra.mxu1 %v310_v30  ;;  %v334_v54 = vand.u32 4294901760, %v333_v13  ;;  %v187_v30 = vand.u32 4294901760, %v186_v44  ;;  %v1307_v44 = vsub.f32 %v58_v25, %v1290_v34  ;;  %v194_v13 = vsub.f32 %v1276_v31, %v193_v43 }
  0x24   :  { %984 = vmatpush.msra.mxu3 %v316_v62  ;;  %403 = vmatpush.msrb.mxu2 %v1041_v14  ;;  %v59_v14 = vld [vmem:[%s1703_s0 + $0x60] sm:$0xff] }
  0x25   :  { %317 = vmatpush.msra.mxu1 %v316_v62  ;;  %110 = vmatpush.msra.mxu0 %v1189_v33  ;;  %v50_v62 = vld [vmem:[%s1703_s0 + $0x18] sm:$0xff]  ;;  %v201_v25 = vand.u32 4294901760, %v1307_v44 }
  0x26   :  { %985 = vmatpush.msra.mxu3 %v322_v57  ;;  %406 = vmatpush.msrb.mxu2 %v1044_v15 }
  0x27   :  { %323 = vmatpush.msra.mxu1 %v322_v57  ;;  %116 = vmatmul.f32.vlgmr.msra.gmra.mxu0 %v115_v2  ;;  %v129_v57 = vand.u32 4294901760, %v1297_v50  ;;  %v195_v2 = vand.u32 4294901760, %v194_v13 }
  0x28   :  { %986 = vmatpush.msra.mxu3 %v328_v1  ;;  %409 = vmatpush.msrb.mxu2 %v1047_v16 }
  0x29   :  { %329 = vmatpush.msra.mxu1 %v328_v1  ;;  %662 = vmatpush.msrb.mxu0 %v242_v21  ;;  %v1317_v21 = vand.u32 4294901760, %v50_v62  ;;  %v1325_v1 = vand.u32 4294901760, %v59_v14 }
  0x2a   :  { %987 = vmatpush.msra.mxu3 %v334_v54  ;;  %412 = vmatpush.msrb.mxu2 %v1056_v19 }
  0x2b   :  { %188 = vmatmul.f32.gmra.mxu2 %v187_v30  ;;  %369 = vmatmul.f32.vlgmr.msra.gmra.mxu3 %v1141_v56  ;;  %v1333_v30 = vsub.f32 %v50_v62, %v1317_v21  ;;  %v1346_v15 = vsub.f32 %v59_v14, %v1325_v1  ;;  %v61_v14 = vld [vmem:[%s1703_s0 + $0x70] sm:$0xff] }
  0x2c   :  { %531 = vmatpush.msrb.mxu3 %v1012_v3  ;;  %335 = vmatpush.msra.mxu1 %v334_v54  ;;  %v130_v54 = vsub.f32 %v1297_v50, %v129_v57 }
  0x2d   :  { %337 = vmatmul.f32.vlgmr.msra.gmra.mxu1 %v1200_v42  ;;  %666 = vmatpush.msrb.mxu0 %v248_v22  ;;  %v137_v16 = vand.u32 4294901760, %v1333_v30  ;;  %v209_v7 = vand.u32 4294901760, %v1346_v15 }
  0x2e   :  { %533 = vmatpush.msrb.mxu3 %v1014_v4  ;;  %789 = vmatpush.msrb.mxu1 %v1012_v3  ;;  %v51_v3 = vld [vmem:[%s1703_s0 + $0x20] sm:$0xff]  ;;  %v131_v22 = vand.u32 4294901760, %v130_v54 }
  0x2f   :  { %415 = vmatpush.msrb.mxu2 %v1059_v20  ;;  %124 = vmatmul.f32.gmra.mxu0 %v123_v58  ;;  %v138_v19 = vsub.f32 %v1333_v30, %v137_v16  ;;  %v210_v58 = vsub.f32 %v1346_v15, %v209_v7 }
  0x30   :  { %535 = vmatpush.msrb.mxu3 %v1016_v5  ;;  %791 = vmatpush.msrb.mxu1 %v1014_v4  ;;  %v202_v4 = vsub.f32 %v1307_v44, %v201_v25 }
  0x31   :  { %670 = vmatpush.msrb.mxu0 %v254_v23  ;;  %418 = vmatpush.msrb.mxu2 %v1075_v28  ;;  %v1353_v23 = vand.u32 4294901760, %v51_v3  ;;  %v139_v20 = vand.u32 4294901760, %v138_v19  ;;  %v1718_v28 = vand.u32 4294901760, %v1098_v36  ;;  %v211_v54 = vand.u32 4294901760, %v210_v58 }
  0x32   :  { %537 = vmatpush.msrb.mxu3 %v1027_v9  ;;  %793 = vmatpush.msrb.mxu1 %v1016_v5  ;;  %v60_v5 = vld [vmem:[%s1703_s0 + $0x68] sm:$0xff]  ;;  %v203_v62 = vand.u32 4294901760, %v202_v4 }
  0x33   :  { %196 = vmatmul.f32.gmra.mxu2 %v195_v2  ;;  %373 = vmatmul.f32.gmra.mxu3 %v1204_v47  ;;  %v1373_v13 = vsub.f32 %v51_v3, %v1353_v23 }
  0x34   :  { %539 = vmatpush.msrb.mxu3 %v1029_v10  ;;  %674 = vmatpush.msrb.mxu0 %v260_v26  ;;  %v1370_v26 = vand.u32 4294901760, %v60_v5 }
  0x35   :  { %341 = vmatmul.f32.gmra.mxu1 %v1240_v37  ;;  %421 = vmatpush.msrb.mxu2 %v1098_v36  ;;  %v1719_v36 = vand.u32 4294901760, %v1104_v40 }
  0x36   :  { %541 = vmatpush.msrb.mxu3 %v1031_v11  ;;  %795 = vmatpush.msrb.mxu1 %v1027_v9  ;;  %v52_v9 = vld [vmem:[%s1703_s0 + $0x28] sm:$0xff] }
  0x37   :  { %132 = vmatmul.f32.gmra.mxu0 %v131_v22  ;;  %424 = vmatpush.msrb.mxu2 %v1104_v40  ;;  %v1397_v2 = vand.u32 4294901760, %v52_v9 }
  0x38   :  { %543 = vmatpush.msrb.mxu3 %v1053_v18  ;;  %678 = vmatpush.msrb.mxu0 %v266_v32  ;;  %v1391_v32 = vsub.f32 %v60_v5, %v1370_v26  ;;  %v1720_v5 = vand.u32 4294901760, %v1117_v46 }
  0x39   :  { %797 = vmatpush.msrb.mxu1 %v1029_v10  ;;  %427 = vmatpush.msrb.mxu2 %v1117_v46  ;;  %v145_v10 = vand.u32 4294901760, %v1373_v13  ;;  %v1414_v4 = vsub.f32 %v52_v9, %v1397_v2  ;;  %v62_v46 = vld [vmem:[%s1703_s0 + $0x78] sm:$0xff]  ;;  %v1721_v9 = vand.u32 4294901760, %v1134_v53 }
  0x3a   :  { %545 = vmatpush.msrb.mxu3 %v1065_v24  ;;  %682 = vmatpush.msrb.mxu0 %v272_v39  ;;  %v1406_v39 = vand.u32 4294901760, %v61_v14  ;;  %v217_v3 = vand.u32 4294901760, %v1391_v32 }
  0x3b   :  { %204 = vmatmul.f32.gmra.mxu2 %v203_v62  ;;  %377 = vmatmul.f32.gmra.mxu3 %v1253_v49 }
  0x3c   :  { %799 = vmatpush.msrb.mxu1 %v1031_v11  ;;  %547 = vmatpush.msrb.mxu3 %v1072_v27  ;;  %v146_v11 = vsub.f32 %v1373_v13, %v145_v10  ;;  %v1425_v22 = vsub.f32 %v61_v14, %v1406_v39  ;;  %v218_v40 = vsub.f32 %v1391_v32, %v217_v3  ;;  %v1451_v14 = vand.u32 4294901760, %v62_v46 }
  0x3d   :  { %345 = vmatmul.f32.gmra.mxu1 %v1285_v45  ;;  %686 = vmatpush.msrb.mxu0 %v1718_v28 }
  0x3e   :  { %430 = vmatpush.msrb.mxu2 %v1134_v53  ;;  %801 = vmatpush.msrb.mxu1 %v1053_v18  ;;  %v53_v18 = vld [vmem:[%s1703_s0 + $0x30] sm:$0xff]  ;;  %v147_v62 = vand.u32 4294901760, %v146_v11  ;;  %v225_v58 = vand.u32 4294901760, %v1425_v22  ;;  %v1722_v53 = vand.u32 4294901760, %v1150_v60  ;;  %v1723_v11 = vand.u32 4294901760, %v1167_v6 }
  0x3f   :  { %140 = vmatmul.f32.gmra.mxu0 %v139_v20  ;;  %549 = vmatpush.msrb.mxu3 %v1095_v35  ;;  %v1435_v19 = vand.u32 4294901760, %v53_v18  ;;  %v219_v20 = vand.u32 4294901760, %v218_v40 }
  0x40   :  { %690 = vmatpush.msrb.mxu0 %v1719_v36  ;;  %433 = vmatpush.msrb.mxu2 %v1150_v60  ;;  %v1473_v36 = vsub.f32 %v62_v46, %v1451_v14  ;;  %v1725_v46 = vand.u32 4294901760, %v1198_v38 }
  0x41   :  { %803 = vmatpush.msrb.mxu1 %v1065_v24  ;;  %551 = vmatpush.msrb.mxu3 %v1106_v41  ;;  %v153_v24 = vand.u32 4294901760, %v1414_v4  ;;  %v1455_v28 = vsub.f32 %v53_v18, %v1435_v19 }
  0x42   :  { %694 = vmatpush.msrb.mxu0 %v1720_v5  ;;  %436 = vmatpush.msrb.mxu2 %v1167_v6  ;;  %v1724_v6 = vand.u32 4294901760, %v1184_v29  ;;  %v233_v40 = vand.u32 4294901760, %v1473_v36 }
  0x43   :  { %212 = vmatmul.f32.gmra.mxu2 %v211_v54  ;;  %381 = vmatmul.f32.gmra.mxu3 %v1290_v34  ;;  %v226_v54 = vsub.f32 %v1425_v22, %v225_v58 }
  0x44   :  { %805 = vmatpush.msrb.mxu1 %v1072_v27  ;;  %553 = vmatpush.msrb.mxu3 %v1131_v52  ;;  %v154_v27 = vsub.f32 %v1414_v4, %v153_v24 }
  0x45   :  { %349 = vmatmul.f32.gmra.mxu1 %v1317_v21  ;;  %698 = vmatpush.msrb.mxu0 %v1721_v9  ;;  %v227_v5 = vand.u32 4294901760, %v226_v54 }
  0x46   :  { %439 = vmatpush.msrb.mxu2 %v1184_v29  ;;  %807 = vmatpush.msrb.mxu1 %v1095_v35  ;;  %v54_v35 = vld [vmem:[%s1703_s0 + $0x38] sm:$0xff]  ;;  %v155_v60 = vand.u32 4294901760, %v154_v27  ;;  %v1726_v29 = vand.u32 4294901760, %v1212_v51  ;;  %v1727_v27 = vand.u32 4294901760, %v1227_v63 }
  0x47   :  { %148 = vmatmul.f32.gmra.mxu0 %v147_v62  ;;  %555 = vmatpush.msrb.mxu3 %v1147_v59  ;;  %v1476_v18 = vand.u32 4294901760, %v54_v35 }
  0x48   :  { %702 = vmatpush.msrb.mxu0 %v1722_v53  ;;  %442 = vmatpush.msrb.mxu2 %v1198_v38 }
  0x49   :  { %809 = vmatpush.msrb.mxu1 %v1106_v41  ;;  %557 = vmatpush.msrb.mxu3 %v1160_v0  ;;  %v161_v41 = vand.u32 4294901760, %v1455_v28 }
  0x4a   :  { %706 = vmatpush.msrb.mxu0 %v1723_v11  ;;  %445 = vmatpush.msrb.mxu2 %v1212_v51 }
  0x4b   :  { %220 = vmatmul.f32.gmra.mxu2 %v219_v20  ;;  %385 = vmatmul.f32.gmra.mxu3 %v1325_v1  ;;  %v162_v62 = vsub.f32 %v1455_v28, %v161_v41 }
  0x4c   :  { %811 = vmatpush.msrb.mxu1 %v1131_v52  ;;  %448 = vmatpush.msrb.mxu2 %v1227_v63  ;;  %v168_v52 = vsub.f32 %v54_v35, %v1476_v18 }
  0x4d   :  { %353 = vmatmul.f32.gmra.mxu1 %v1353_v23  ;;  %559 = vmatpush.msrb.mxu3 %v1180_v17  ;;  %v163_v9 = vand.u32 4294901760, %v162_v62 }
  0x4e   :  { %710 = vmatpush.msrb.mxu0 %v1724_v6  ;;  %813 = vmatpush.msrb.mxu1 %v1147_v59  ;;  %v234_v59 = vsub.f32 %v1473_v36, %v233_v40  ;;  %v169_v20 = vand.u32 4294901760, %v168_v52 }
  0x4f   :  { %156 = vmatmul.f32.gmra.mxu0 %v155_v60  ;;  %561 = vmatpush.msrb.mxu3 %v1189_v33 }
  0x50   :  { %714 = vmatpush.msrb.mxu0 %v1725_v46  ;;  %815 = vmatpush.msrb.mxu1 %v1160_v0  ;;  %v235_v0 = vand.u32 4294901760, %v234_v59  ;;  %v170_v38 = vsub.f32 %v168_v52, %v169_v20 }
  0x52   :  { %718 = vmatpush.msrb.mxu0 %v1726_v29  ;;  %817 = vmatpush.msrb.mxu1 %v1180_v17  ;;  %v171_v17 = vand.u32 4294901760, %v170_v38 }
  0x53   :  { %228 = vmatmul.f32.gmra.mxu2 %v227_v5  ;;  %389 = vmatmul.f32.gmra.mxu3 %v1370_v26 }
  0x54   :  { %722 = vmatpush.msrb.mxu0 %v1727_v27  ;;  %819 = vmatpush.msrb.mxu1 %v1189_v33  ;;  %v1728_v33 = vand.u32 4294901760, %v1215_v55 }
  0x55   :  { %357 = vmatmul.f32.gmra.mxu1 %v1397_v2 }
  0x57   :  { %164 = vmatmul.f32.gmra.mxu0 %v163_v9 }
  0x5b   :  { %236 = vmatmul.f32.gmra.mxu2 %v235_v0  ;;  %393 = vmatmul.f32.gmra.mxu3 %v1406_v39 }
  0x5d   :  { %361 = vmatmul.f32.gmra.mxu1 %v1435_v19 }
  0x5f   :  { %172 = vmatmul.f32.gmra.mxu0 %v171_v17 }
  0x63   :  { %397 = vmatmul.f32.gmra.mxu3 %v1451_v14  ;;  %451 = vmatmul.f32.vlgmr.msrb.gmra.mxu2 %v1215_v55 }
  0x65   :  { %365 = vmatmul.f32.gmra.mxu1 %v1476_v18 }
  0x67   :  { %724 = vmatmul.f32.vlgmr.msrb.gmra.mxu0 %v1200_v42 }
  0x6b   :  { %456 = vmatmul.f32.gmra.mxu2 %v1261_v61  ;;  %565 = vmatmul.f32.vlgmr.msrb.gmra.mxu3 %v1728_v33 }
  0x6d   :  { %821 = vmatmul.f32.vlgmr.msrb.gmra.mxu1 %v1200_v42  ;;  %v1729_v42 = vand.u32 4294901760, %v1174_v8 }
  0x6f   :  { %728 = vmatmul.f32.gmra.mxu0 %v1240_v37 }
  0x73   :  { %461 = vmatmul.f32.gmra.mxu2 %v1297_v50  ;;  %571 = vmatmul.f32.gmra.mxu3 %v121_v48 }
  0x75   :  { %825 = vmatmul.f32.gmra.mxu1 %v1240_v37 }
  0x77   :  { %732 = vmatmul.f32.gmra.mxu0 %v1285_v45 }
  0x7b   :  { %466 = vmatmul.f32.gmra.mxu2 %v1333_v30  ;;  %577 = vmatmul.f32.gmra.mxu3 %v129_v57  ;;  %v1730_v57 = vand.u32 4294901760, %v1234_v12 }
  0x7d   :  { %829 = vmatmul.f32.gmra.mxu1 %v1285_v45 }
  0x7f   :  { %736 = vmatmul.f32.gmra.mxu0 %v1317_v21 }
  0x83   :  { %471 = vmatmul.f32.gmra.mxu2 %v1373_v13  ;;  %583 = vmatmul.f32.gmra.mxu3 %v137_v16 }
  0x85   :  { %833 = vmatmul.f32.gmra.mxu1 %v1317_v21 }
  0x87   :  { %740 = vmatmul.f32.gmra.mxu0 %v1353_v23 }
  0x8b   :  { %476 = vmatmul.f32.gmra.mxu2 %v1414_v4  ;;  %589 = vmatmul.f32.gmra.mxu3 %v145_v10 }
  0x8d   :  { %837 = vmatmul.f32.gmra.mxu1 %v1353_v23 }
  0x8f   :  { %744 = vmatmul.f32.gmra.mxu0 %v1397_v2 }
  0x93   :  { %481 = vmatmul.f32.gmra.mxu2 %v1455_v28  ;;  %595 = vmatmul.f32.gmra.mxu3 %v153_v24 }
  0x95   :  { %841 = vmatmul.f32.gmra.mxu1 %v1397_v2 }
  0x97   :  { %748 = vmatmul.f32.gmra.mxu0 %v1435_v19 }
  0x9b   :  { %486 = vmatmul.f32.gmra.mxu2 %v168_v52  ;;  %601 = vmatmul.f32.gmra.mxu3 %v161_v41 }
  0x9d   :  { %845 = vmatmul.f32.gmra.mxu1 %v1435_v19 }
  0x9f   :  { %752 = vmatmul.f32.gmra.mxu0 %v1476_v18 }
  0xa3   :  { %491 = vmatmul.f32.gmra.mxu2 %v1174_v8  ;;  %607 = vmatmul.f32.gmra.mxu3 %v169_v20 }
  0xa4   :  { %v1542_v45 = vpop.f32.mrf.mxu0 }
  0xa5   :  { %849 = vmatmul.f32.gmra.mxu1 %v1476_v18 }
  0xa6   :  { %v181_v48 = vpop.f32.mrf.mxu2 }
  0xa7   :  { %756 = vmatmul.f32.gmra.mxu0 %v1141_v56 }
  0xaa   :  { %v1546_v37 = vpop.f32.mrf.mxu1 }
  0xab   :  { %496 = vmatmul.f32.gmra.mxu2 %v1234_v12  ;;  %613 = vmatmul.f32.gmra.mxu3 %v1729_v42 }
  0xac   :  { %v1551_v50 = vpop.f32.mrf.mxu0 }
  0xad   :  { %853 = vmatmul.f32.gmra.mxu1 %v1141_v56 }
  0xae   :  { %v189_v51 = vpop.f32.mrf.mxu2  ;;  %v370_v55 = vpop.f32.mrf.mxu3 }
  0xaf   :  { %v1554_v63 = vadd.f32 %v370_v55, %v181_v48  ;;  %760 = vmatmul.f32.gmra.mxu0 %v1204_v47 }
  0xb2   :  { %v1557_v61 = vpop.f32.mrf.mxu1 }
  0xb3   :  { %501 = vmatmul.f32.gmra.mxu2 %v1276_v31  ;;  %619 = vmatmul.f32.gmra.mxu3 %v1730_v57 }
  0xb4   :  { %v1562_v21 = vpop.f32.mrf.mxu0 }
  0xb5   :  { %857 = vmatmul.f32.gmra.mxu1 %v1204_v47 }
  0xb6   :  { %v197_v8 = vpop.f32.mrf.mxu2  ;;  %v374_v30 = vpop.f32.mrf.mxu3 }
  0xb7   :  { %v1565_v56 = vadd.f32 %v374_v30, %v189_v51  ;;  %764 = vmatmul.f32.gmra.mxu0 %v1253_v49 }
  0xba   :  { %v1568_v16 = vpop.f32.mrf.mxu1 }
  0xbb   :  { %506 = vmatmul.f32.gmra.mxu2 %v1307_v44  ;;  %625 = vmatmul.f32.gmra.mxu3 %v193_v43  ;;  %v347_v17 = vadd.f32 %v1568_v16, %v1562_v21 }
  0xbc   :  { %v1573_v23 = vpop.f32.mrf.mxu0 }
  0xbd   :  { %861 = vmatmul.f32.gmra.mxu1 %v1253_v49 }
  0xbe   :  { %v205_v12 = vpop.f32.mrf.mxu2  ;;  %v378_v13 = vpop.f32.mrf.mxu3 }
  0xbf   :  { %v1576_v47 = vadd.f32 %v378_v13, %v197_v8  ;;  %768 = vmatmul.f32.gmra.mxu0 %v1290_v34 }
  0xc2   :  { %v1579_v10 = vpop.f32.mrf.mxu1 }
  0xc3   :  { %511 = vmatmul.f32.gmra.mxu2 %v1346_v15  ;;  %631 = vmatmul.f32.gmra.mxu3 %v201_v25 }
  0xc4   :  { %v1584_v2 = vpop.f32.mrf.mxu0 }
  0xc5   :  { %865 = vmatmul.f32.gmra.mxu1 %v1290_v34 }
  0xc6   :  { %v213_v31 = vpop.f32.mrf.mxu2  ;;  %v382_v43 = vpop.f32.mrf.mxu3 }
  0xc7   :  { %v1587_v49 = vadd.f32 %v382_v43, %v205_v12  ;;  %772 = vmatmul.f32.gmra.mxu0 %v1325_v1 }
  0xca   :  { %v1590_v4 = vpop.f32.mrf.mxu1 }
  0xcb   :  { %516 = vmatmul.f32.gmra.mxu2 %v1391_v32  ;;  %637 = vmatmul.f32.gmra.mxu3 %v209_v7  ;;  %v355_v43 = vadd.f32 %v1590_v4, %v1584_v2 }
  0xcc   :  { %v1595_v24 = vpop.f32.mrf.mxu0 }
  0xcd   :  { %869 = vmatmul.f32.gmra.mxu1 %v1325_v1 }
  0xce   :  { %v221_v44 = vpop.f32.mrf.mxu2  ;;  %v386_v25 = vpop.f32.mrf.mxu3 }
  0xcf   :  { %v1598_v34 = vadd.f32 %v386_v25, %v213_v31  ;;  %776 = vmatmul.f32.gmra.mxu0 %v1370_v26 }
  0xd2   :  { %v1601_v19 = vpop.f32.mrf.mxu1 }
  0xd3   :  { %521 = vmatmul.f32.gmra.mxu2 %v1425_v22  ;;  %643 = vmatmul.f32.gmra.mxu3 %v217_v3 }
  0xd4   :  { %v1606_v28 = vpop.f32.mrf.mxu0 }
  0xd5   :  { %873 = vmatmul.f32.gmra.mxu1 %v1370_v26 }
  0xd6   :  { %v229_v15 = vpop.f32.mrf.mxu2  ;;  %v390_v7 = vpop.f32.mrf.mxu3 }
  0xd7   :  { %v1609_v1 = vadd.f32 %v390_v7, %v221_v44  ;;  %780 = vmatmul.f32.gmra.mxu0 %v1406_v39 }
  0xda   :  { %v1612_v53 = vpop.f32.mrf.mxu1 }
  0xdb   :  { %526 = vmatmul.f32.gmra.mxu2 %v1473_v36  ;;  %649 = vmatmul.f32.gmra.mxu3 %v225_v58  ;;  %v343_v36 = vadd.f32 %v1557_v61, %v1551_v50  ;;  %v351_v61 = vadd.f32 %v1579_v10, %v1573_v23 }
  0xdc   :  { %v1617_v35 = vpop.f32.mrf.mxu0 }
  0xdd   :  { %877 = vmatmul.f32.gmra.mxu1 %v1406_v39  ;;  %v339_v39 = vadd.f32 %v1546_v37, %v1542_v45 }
  0xde   :  { %v237_v32 = vpop.f32.mrf.mxu2  ;;  %v394_v3 = vpop.f32.mrf.mxu3 }
  0xdf   :  { %v1620_v26 = vadd.f32 %v394_v3, %v229_v15  ;;  %784 = vmatmul.f32.gmra.mxu0 %v1451_v14 }
  0xe2   :  { %v1623_v54 = vpop.f32.mrf.mxu1 }
  0xe3   :  { %655 = vmatmul.f32.gmra.mxu3 %v233_v40 }
  0xe4   :  { %v725_v11 = vpop.f32.mrf.mxu0 }
  0xe5   :  { %881 = vmatmul.f32.gmra.mxu1 %v1451_v14 }
  0xe6   :  { %v398_v22 = vpop.f32.mrf.mxu3  ;;  %v452_v58 = vpop.f32.mrf.mxu2 }
  0xe7   :  { %v1628_v60 = vadd.f32 %v398_v22, %v237_v32  ;;  %v453_v6 = vadd.f32 %v452_v58, %v339_v39 }
  0xea   :  { %v822_v41 = vpop.f32.mrf.mxu1 }
  0xec   :  { %v729_v18 = vpop.f32.mrf.mxu0 }
  0xee   :  { %v457_v5 = vpop.f32.mrf.mxu2  ;;  %v566_v62 = vpop.f32.mrf.mxu3 }
  0xef   :  { %v567_v52 = vadd.f32 %v566_v62, %v453_v6  ;;  %v458_v59 = vadd.f32 %v457_v5, %v343_v36  ;;  %v363_v5 = vadd.f32 %v1612_v53, %v1606_v28 }
  0xf1   :  { %v726_v46 = vadd.f32 %v725_v11, %v567_v52  ;;  %v359_v11 = vadd.f32 %v1601_v19, %v1595_v24 }
  0xf2   :  { %v826_v29 = vpop.f32.mrf.mxu1 }
  0xf3   :  { %v823_v40 = vadd.f32 %v822_v41, %v726_v46 }
  0xf4   :  { %v733_v14 = vpop.f32.mrf.mxu0 }
  0xf5   :  { %936 = vst [vmem:[%s1704_s2] sm:$0xff] %v823_v40 }
  0xf6   :  { %v462_v9 = vpop.f32.mrf.mxu2  ;;  %v572_v20 = vpop.f32.mrf.mxu3 }
  0xf7   :  { %v573_v27 = vadd.f32 %v572_v20, %v458_v59  ;;  %v463_v48 = vadd.f32 %v462_v9, %v347_v17 }
  0xf9   :  { %v730_v0 = vadd.f32 %v729_v18, %v573_v27 }
  0xfa   :  { %v830_v38 = vpop.f32.mrf.mxu1 }
  0xfb   :  { %v827_v33 = vadd.f32 %v826_v29, %v730_v0 }
  0xfc   :  { %v737_v45 = vpop.f32.mrf.mxu0 }
  0xfd   :  { %937 = vst [vmem:[%s1704_s2 + $0x8] sm:$0xff] %v827_v33 }
  0xfe   :  { %v467_v37 = vpop.f32.mrf.mxu2  ;;  %v578_v42 = vpop.f32.mrf.mxu3 }
  0xff   :  { %v579_v50 = vadd.f32 %v578_v42, %v463_v48  ;;  %v468_v30 = vadd.f32 %v467_v37, %v351_v61 }
 0x101   :  { %v734_v51 = vadd.f32 %v733_v14, %v579_v50  ;;  %v367_v14 = vadd.f32 %v1623_v54, %v1617_v35 }
 0x102   :  { %v834_v55 = vpop.f32.mrf.mxu1 }
 0x103   :  { %v831_v57 = vadd.f32 %v830_v38, %v734_v51 }
 0x104   :  { %v741_v8 = vpop.f32.mrf.mxu0 }
 0x105   :  { %938 = vst [vmem:[%s1704_s2 + $0x10] sm:$0xff] %v831_v57 }
 0x106   :  { %v472_v21 = vpop.f32.mrf.mxu2  ;;  %v584_v16 = vpop.f32.mrf.mxu3 }
 0x107   :  { %v585_v12 = vadd.f32 %v584_v16, %v468_v30  ;;  %v473_v15 = vadd.f32 %v472_v21, %v355_v43 }
 0x109   :  { %v738_v13 = vadd.f32 %v737_v45, %v585_v12 }
 0x10a   :  { %v838_v31 = vpop.f32.mrf.mxu1 }
 0x10b   :  { %v835_v44 = vadd.f32 %v834_v55, %v738_v13 }
 0x10c   :  { %v745_v25 = vpop.f32.mrf.mxu0 }
 0x10d   :  { %939 = vst [vmem:[%s1704_s2 + $0x18] sm:$0xff] %v835_v44 }
 0x10e   :  { %v477_v23 = vpop.f32.mrf.mxu2  ;;  %v590_v10 = vpop.f32.mrf.mxu3 }
 0x10f   :  { %v591_v7 = vadd.f32 %v590_v10, %v473_v15  ;;  %v478_v41 = vadd.f32 %v477_v23, %v359_v11 }
 0x111   :  { %v742_v32 = vadd.f32 %v741_v8, %v591_v7 }
 0x112   :  { %v842_v3 = vpop.f32.mrf.mxu1 }
 0x113   :  { %v839_v22 = vadd.f32 %v838_v31, %v742_v32 }
 0x114   :  { %v749_v58 = vpop.f32.mrf.mxu0 }
 0x115   :  { %940 = vst [vmem:[%s1704_s2 + $0x20] sm:$0xff] %v839_v22 }
 0x116   :  { %v482_v2 = vpop.f32.mrf.mxu2  ;;  %v596_v4 = vpop.f32.mrf.mxu3 }
 0x117   :  { %v597_v39 = vadd.f32 %v596_v4, %v478_v41  ;;  %v483_v46 = vadd.f32 %v482_v2, %v363_v5 }
 0x119   :  { %v746_v18 = vadd.f32 %v745_v25, %v597_v39 }
 0x11a   :  { %v846_v6 = vpop.f32.mrf.mxu1 }
 0x11b   :  { %v843_v62 = vadd.f32 %v842_v3, %v746_v18 }
 0x11c   :  { %v753_v52 = vpop.f32.mrf.mxu0 }
 0x11d   :  { %941 = vst [vmem:[%s1704_s2 + $0x28] sm:$0xff] %v843_v62 }
 0x11e   :  { %v487_v24 = vpop.f32.mrf.mxu2  ;;  %v602_v19 = vpop.f32.mrf.mxu3 }
 0x11f   :  { %v603_v29 = vadd.f32 %v602_v19, %v483_v46  ;;  %v488_v20 = vadd.f32 %v487_v24, %v367_v14 }
 0x121   :  { %v750_v36 = vadd.f32 %v749_v58, %v603_v29 }
 0x122   :  { %v850_v40 = vpop.f32.mrf.mxu1 }
 0x123   :  { %v847_v59 = vadd.f32 %v846_v6, %v750_v36 }
 0x124   :  { %v757_v9 = vpop.f32.mrf.mxu0 }
 0x125   :  { %942 = vst [vmem:[%s1704_s2 + $0x30] sm:$0xff] %v847_v59 }
 0x126   :  { %v492_v28 = vpop.f32.mrf.mxu2  ;;  %v608_v53 = vpop.f32.mrf.mxu3 }
 0x127   :  { %v609_v27 = vadd.f32 %v608_v53, %v488_v20  ;;  %v493_v45 = vadd.f32 %v492_v28, %v1554_v63 }
 0x129   :  { %v754_v0 = vadd.f32 %v753_v52, %v609_v27 }
 0x12a   :  { %v854_v38 = vpop.f32.mrf.mxu1 }
 0x12b   :  { %v851_v17 = vadd.f32 %v850_v40, %v754_v0 }
 0x12c   :  { %v761_v33 = vpop.f32.mrf.mxu0 }
 0x12d   :  { %943 = vst [vmem:[%s1704_s2 + $0x38] sm:$0xff] %v851_v17 }
 0x12e   :  { %v497_v35 = vpop.f32.mrf.mxu2  ;;  %v614_v54 = vpop.f32.mrf.mxu3 }
 0x12f   :  { %v615_v48 = vadd.f32 %v614_v54, %v493_v45  ;;  %v498_v55 = vadd.f32 %v497_v35, %v1565_v56 }
 0x131   :  { %v758_v37 = vadd.f32 %v757_v9, %v615_v48 }
 0x132   :  { %v858_v42 = vpop.f32.mrf.mxu1 }
 0x133   :  { %v855_v50 = vadd.f32 %v854_v38, %v758_v37 }
 0x134   :  { %v765_v51 = vpop.f32.mrf.mxu0 }
 0x135   :  { %944 = vst [vmem:[%s1704_s2 + $0x40] sm:$0xff] %v855_v50 }
 0x136   :  { %v502_v61 = vpop.f32.mrf.mxu2  ;;  %v620_v57 = vpop.f32.mrf.mxu3 }
 0x137   :  { %v621_v63 = vadd.f32 %v620_v57, %v498_v55  ;;  %v503_v16 = vadd.f32 %v502_v61, %v1576_v47 }
 0x139   :  { %v762_v8 = vadd.f32 %v761_v33, %v621_v63 }
 0x13a   :  { %v862_v30 = vpop.f32.mrf.mxu1 }
 0x13b   :  { %v859_v21 = vadd.f32 %v858_v42, %v762_v8 }
 0x13c   :  { %v769_v12 = vpop.f32.mrf.mxu0 }
 0x13d   :  { %945 = vst [vmem:[%s1704_s2 + $0x48] sm:$0xff] %v859_v21 }
 0x13e   :  { %v507_v13 = vpop.f32.mrf.mxu2  ;;  %v626_v31 = vpop.f32.mrf.mxu3 }
 0x13f   :  { %v627_v56 = vadd.f32 %v626_v31, %v503_v16  ;;  %v508_v15 = vadd.f32 %v507_v13, %v1587_v49 }
 0x141   :  { %v766_v43 = vadd.f32 %v765_v51, %v627_v56 }
 0x142   :  { %v866_v44 = vpop.f32.mrf.mxu1 }
 0x143   :  { %v863_v25 = vadd.f32 %v862_v30, %v766_v43 }
 0x144   :  { %v773_v7 = vpop.f32.mrf.mxu0 }
 0x145   :  { %946 = vst [vmem:[%s1704_s2 + $0x50] sm:$0xff] %v863_v25 }
 0x146   :  { %v512_v23 = vpop.f32.mrf.mxu2  ;;  %v632_v10 = vpop.f32.mrf.mxu3 }
 0x147   :  { %v633_v47 = vadd.f32 %v632_v10, %v508_v15  ;;  %v513_v22 = vadd.f32 %v512_v23, %v1598_v34 }
 0x149   :  { %v770_v32 = vadd.f32 %v769_v12, %v633_v47 }
 0x14a   :  { %v870_v3 = vpop.f32.mrf.mxu1 }
 0x14b   :  { %v867_v11 = vadd.f32 %v866_v44, %v770_v32 }
 0x14c   :  { %v777_v4 = vpop.f32.mrf.mxu0 }
 0x14d   :  { %947 = vst [vmem:[%s1704_s2 + $0x58] sm:$0xff] %v867_v11 }
 0x14e   :  { %v517_v58 = vpop.f32.mrf.mxu2  ;;  %v638_v41 = vpop.f32.mrf.mxu3 }
 0x14f   :  { %v639_v49 = vadd.f32 %v638_v41, %v513_v22  ;;  %v518_v6 = vadd.f32 %v517_v58, %v1609_v1 }
 0x151   :  { %v774_v2 = vadd.f32 %v773_v7, %v639_v49 }
 0x152   :  { %v874_v18 = vpop.f32.mrf.mxu1 }
 0x153   :  { %v871_v39 = vadd.f32 %v870_v3, %v774_v2 }
 0x154   :  { %v781_v24 = vpop.f32.mrf.mxu0 }
 0x155   :  { %948 = vst [vmem:[%s1704_s2 + $0x60] sm:$0xff] %v871_v39 }
 0x156   :  { %v644_v5 = vpop.f32.mrf.mxu3  ;;  %v522_v34 = vpop.f32.mrf.mxu2 }
 0x157   :  { %v645_v62 = vadd.f32 %v644_v5, %v518_v6  ;;  %v523_v19 = vadd.f32 %v522_v34, %v1620_v26 }
 0x159   :  { %v778_v52 = vadd.f32 %v777_v4, %v645_v62 }
 0x15a   :  { %v878_v36 = vpop.f32.mrf.mxu1 }
 0x15b   :  { %v875_v46 = vadd.f32 %v874_v18, %v778_v52 }
 0x15c   :  { %v785_v28 = vpop.f32.mrf.mxu0 }
 0x15d   :  { %949 = vst [vmem:[%s1704_s2 + $0x68] sm:$0xff] %v875_v46 }
 0x15e   :  { %v650_v29 = vpop.f32.mrf.mxu3  ;;  %v527_v14 = vpop.f32.mrf.mxu2 }
 0x15f   :  { %v651_v40 = vadd.f32 %v650_v29, %v523_v19  ;;  %v528_v9 = vadd.f32 %v527_v14, %v1628_v60 }
 0x161   :  { %v782_v1 = vadd.f32 %v781_v24, %v651_v40 }
 0x162   :  { %v882_v26 = vpop.f32.mrf.mxu1 }
 0x163   :  { %v879_v59 = vadd.f32 %v878_v36, %v782_v1 }
 0x165   :  { %950 = vst [vmem:[%s1704_s2 + $0x70] sm:$0xff] %v879_v59 }
 0x166   :  { %v656_v20 = vpop.f32.mrf.mxu3 }
 0x167   :  { %v657_v53 = vadd.f32 %v656_v20, %v528_v9 }
 0x169   :  { %v786_v27 = vadd.f32 %v785_v28, %v657_v53 }
 0x16b   :  { %v883_v0 = vadd.f32 %v882_v26, %v786_v27 }
 0x16d   :  { %951 = vst [vmem:[%s1704_s2 + $0x78] sm:$0xff] %v883_v0 }

</bundles_post_ra>
